<compile_context>
chip_gen: v7x
topology: tpu7x:2x2x1
jax: 0.10.0
libtpu: 0.0.40
codegen_flags: <defaults>
</compile_context>

<pallas_src>
import math

import jax
import jax.numpy as jnp
from jax.experimental import pallas as pl
from jax.experimental.pallas import tpu as pltpu

NEG_INIT = -1e30          # running-max init (finite; no -inf arithmetic anywhere)
LEAKY_SLOPE = 0.01        # F.leaky_relu default negative slope
VMEM_BUDGET = 48 * 1024 * 1024   # portable: leaves headroom under v7x's 64 MiB physical VMEM


def _round_up(x, m):
    return ((x + m - 1) // m) * m


def _pick_tile(n, candidates):
    """Largest candidate that evenly divides n (n is always a multiple of 128 here)."""
    for c in candidates:
        if c <= n and n % c == 0:
            return c
    return n


# --------------------------------------------------------------------------- #
# VMEM footprint estimates (double-buffered inputs/outputs, lane/sublane padded)
# --------------------------------------------------------------------------- #
def _proj_vmem_bytes(tmp, in_dim, dp):
    b = 2 * tmp * max(in_dim, 128) * 2        # h tile, bf16
    b += 2 * max(in_dim, 8) * dp * 2          # W, bf16
    b += 2 * 2 * 8 * dp * 4                   # a_src / a_dst rows, f32
    b += 2 * tmp * dp * 2                     # z output tile, bf16
    b += 2 * 2 * tmp * 128 * 4                # s / d (tmp,1) outputs, lane-padded f32
    return b


def _attn_vmem_bytes(np_, dp, tm, ts, z_resident):
    b = 2 * tm * ts * 1                       # adjacency tile, int8
    b += 2 * tm * 128 * 4                     # d (tm,1) tile, lane-padded f32
    b += 2 * 8 * ts * 4                       # s (1,ts) tile, sublane-padded f32
    b += 2 * tm * dp * 4                      # output/accumulator block, f32
    b += 2 * tm * 128 * 4                     # m, l scratch, lane-padded f32
    b += (2 * np_ * dp * 2) if z_resident else (2 * ts * dp * 2)   # z, bf16
    return b


def _choose_attn_config(np_, dp):
    """Largest (TM, TS) that fit the budget; prefer a VMEM-resident z."""
    tm_cands = [c for c in (512, 256, 128) if np_ % c == 0] or [np_]
    ts_cands = [c for c in (2048, 1024, 512, 256, 128) if np_ % c == 0] or [np_]
    # Keep >= 2 dst blocks when possible so the "parallel" axis can still split
    # across v7x's two TensorCores.
    tm_pref = [c for c in tm_cands if np_ // c >= 2] or tm_cands
    for tm in tm_pref:
        for ts in ts_cands:
            for resident in (True, False):
                if _attn_vmem_bytes(np_, dp, tm, ts, resident) <= VMEM_BUDGET:
                    return tm, ts, resident
    return tm_cands[-1], ts_cands[-1], False


def _vmem_limit(estimate_bytes):
    return min(56 << 20, max(32 << 20, estimate_bytes + (8 << 20)))


# --------------------------------------------------------------------------- #
# Stage 1: projection z = h @ W (bf16 MXU, f32 acc) + per-node attention scores
#          s[i] = z[i] . a_src,  d[i] = z[i] . a_dst  (VPU mul + XLU lane reduce)
# --------------------------------------------------------------------------- #
def _proj_kernel(h_ref, w_ref, al_ref, ar_ref, z_ref, s_ref, d_ref):
    z = jnp.dot(h_ref[...], w_ref[...], preferred_element_type=jnp.float32)  # (TMp, Dp) f32
    s_ref[...] = jnp.sum(z * al_ref[...], axis=-1, keepdims=True)            # src-half score
    d_ref[...] = jnp.sum(z * ar_ref[...], axis=-1, keepdims=True)            # dst-half score
    z_ref[...] = z.astype(jnp.bfloat16)


# --------------------------------------------------------------------------- #
# Stage 2: tiled online masked softmax + alpha @ z
#   grid = (dst blocks [parallel], src blocks [arbitrary / reduction, last])
# --------------------------------------------------------------------------- #
def _make_attn_kernel(z_resident, ts):
    def kernel(d_ref, s_ref, z_ref, adj_ref, out_ref, m_sc, l_sc):
        j = pl.program_id(1)

        @pl.when(j == 0)
        def _():
            m_sc[...] = jnp.full_like(m_sc, NEG_INIT)
            l_sc[...] = jnp.zeros_like(l_sc)
            out_ref[...] = jnp.zeros_like(out_ref)

        # e[dst, src] = leaky_relu(a_dst.z[dst] + a_src.z[src])
        e = d_ref[...] + s_ref[...]                     # (TM,1)+(1,TS) -> (TM,TS) f32
        e = jnp.maximum(e, LEAKY_SLOPE * e)             # leaky_relu, no select

        # Online softmax. The running max is taken over ALL scores in the row
        # (edges and non-edges): softmax is shift-invariant, so shifting by an
        # upper bound of the edge-max is exact, keeps every exp argument <= 0
        # (no overflow / NaN), and lets the adjacency be applied as a cheap
        # multiplicative {0,1} factor after the exp (masked lanes exactly 0,
        # no where/select in the hot loop).
        # Caveat: if a NON-edge score exceeds every edge score of a row by more
        # than ~80 post-leaky-relu, edge weights underflow and that row degrades
        # toward the guarded 0 output.
        # TODO(synk): switch to an additive -1e30 bias (+1 VPU op/element) if
        # such extreme score ranges ever matter.
        m_cur = jnp.max(e, axis=-1, keepdims=True)
        m_new = jnp.maximum(m_sc[...], m_cur)
        corr = jnp.exp(m_sc[...] - m_new)
        p = jnp.exp(e - m_new) * adj_ref[...].astype(jnp.float32)   # (TM, TS) f32

        l_sc[...] = corr * l_sc[...] + jnp.sum(p, axis=-1, keepdims=True)

        if z_resident:
            # z block is the full (Np, Dp) array, fetched once; slice the src rows.
            src0 = pl.multiple_of(j * ts, ts)
            z_blk = z_ref[pl.ds(src0, ts), :]
        else:
            z_blk = z_ref[...]

        # Accumulate straight into the output block: its block index (i, 0) is
        # constant along the src (reduction) axis, so it stays resident in VMEM.
        out_ref[...] = corr * out_ref[...] + jnp.dot(
            p.astype(jnp.bfloat16), z_blk, preferred_element_type=jnp.float32)
        m_sc[...] = m_new

        @pl.when(j == pl.num_programs(1) - 1)
        def _():
            # Isolated / padded nodes (no in-edges): l == 0 -> output 0, not NaN.
            inv = pl.reciprocal(jnp.maximum(l_sc[...], 1e-30), approx=True)
            out_ref[...] = out_ref[...] * inv

    return kernel


# --------------------------------------------------------------------------- #
# Wrapper
# --------------------------------------------------------------------------- #
def gat_layer(h, fc_w, attn_w, adj):
    """h: (N, in_dim), fc_w: (out_dim, in_dim), attn_w: (1, 2*out_dim), adj[dst, src]: (N, N) {0,1}."""
    N, in_dim = h.shape
    out_dim = fc_w.shape[0]
    Dp = _round_up(out_dim, 128)                 # lane-dense feature width
    Np = _round_up(N, 128)                       # padded node count (pipelining / tiling)

    # bf16 operands for the MXU (all accumulation stays f32 inside the kernels)
    h_bf = h.astype(jnp.bfloat16)
    adj_i8 = adj.astype(jnp.int8)                # adjacency streams as int8 (1 B/elem)
    if Np != N:
        # Padded rows have no in-edges and zero features -> guarded to 0 and sliced off.
        h_bf = jnp.zeros((Np, in_dim), jnp.bfloat16).at[:N, :].set(h_bf)
        adj_i8 = jnp.zeros((Np, Np), jnp.int8).at[:N, :N].set(adj_i8)

    w_pad = jnp.zeros((in_dim, Dp), jnp.bfloat16).at[:, :out_dim].set(
        fc_w.T.astype(jnp.bfloat16))
    a_src = jnp.zeros((1, Dp), jnp.float32).at[:, :out_dim].set(
        attn_w[:, :out_dim].astype(jnp.float32))
    a_dst = jnp.zeros((1, Dp), jnp.float32).at[:, :out_dim].set(
        attn_w[:, out_dim:].astype(jnp.float32))

    # ---- stage 1: projection + per-node scores (streaming-bound for small in_dim) ----
    TMp = _pick_tile(Np, (1024, 512, 256, 128))
    vmem1 = _vmem_limit(_proj_vmem_bytes(TMp, in_dim, Dp))
    z, s, d = pl.pallas_call(
        _proj_kernel,
        out_shape=(jax.ShapeDtypeStruct((Np, Dp), jnp.bfloat16),
                   jax.ShapeDtypeStruct((Np, 1), jnp.float32),
                   jax.ShapeDtypeStruct((Np, 1), jnp.float32)),
        grid_spec=pltpu.PrefetchScalarGridSpec(
            num_scalar_prefetch=0,
            grid=(Np // TMp,),
            in_specs=[
                pl.BlockSpec((TMp, in_dim), lambda i: (i, 0)),
                pl.BlockSpec((in_dim, Dp), lambda i: (0, 0)),
                pl.BlockSpec((1, Dp), lambda i: (0, 0)),
                pl.BlockSpec((1, Dp), lambda i: (0, 0)),
            ],
            out_specs=[
                pl.BlockSpec((TMp, Dp), lambda i: (i, 0)),
                pl.BlockSpec((TMp, 1), lambda i: (i, 0)),
                pl.BlockSpec((TMp, 1), lambda i: (i, 0)),
            ]),
        compiler_params=pltpu.CompilerParams(
            dimension_semantics=("parallel",),
            vmem_limit_bytes=vmem1),
    )(h_bf, w_pad, a_src, a_dst)

    # src scores consumed along the lane axis in stage 2: one tiny (Np*4 B) XLA
    # relayout; cheaper / lower-risk than an in-kernel (TMp,1)->(1,TMp) transpose.
    s_row = s.reshape(1, Np)

    # ---- stage 2: tiled online masked softmax + alpha @ z ----
    TM, TS, z_resident = _choose_attn_config(Np, Dp)
    vmem2 = _vmem_limit(_attn_vmem_bytes(Np, Dp, TM, TS, z_resident))

    if z_resident:
        # Single fetch of the whole z, kept in VMEM across the entire grid.
        z_spec = pl.BlockSpec((Np, Dp), lambda i, j: (0, 0))
    else:
        # Fallback: stream z per src block (large tiles keep re-reads modest).
        z_spec = pl.BlockSpec((TS, Dp), lambda i, j: (j, 0))

    out_pad = pl.pallas_call(
        _make_attn_kernel(z_resident, TS),
        out_shape=jax.ShapeDtypeStruct((Np, Dp), jnp.float32),
        grid_spec=pltpu.PrefetchScalarGridSpec(
            num_scalar_prefetch=0,
            grid=(Np // TM, Np // TS),                            # reduction (src) axis last
            in_specs=[
                pl.BlockSpec((TM, 1), lambda i, j: (i, 0)),       # d  (dst scores, f32)
                pl.BlockSpec((1, TS), lambda i, j: (0, j)),       # s  (src scores, f32)
                z_spec,                                           # z  (src features, bf16)
                pl.BlockSpec((TM, TS), lambda i, j: (i, j)),      # adjacency (int8)
            ],
            out_specs=pl.BlockSpec((TM, Dp), lambda i, j: (i, 0)),
            scratch_shapes=[
                pltpu.VMEM((TM, 1), jnp.float32),    # running max m
                pltpu.VMEM((TM, 1), jnp.float32),    # running denom l
            ]),
        compiler_params=pltpu.CompilerParams(
            # dst blocks shard across the 2 TensorCores on v7x; src axis is the reduction
            dimension_semantics=("parallel", "arbitrary"),
            vmem_limit_bytes=vmem2),
    )(d, s_row, z, adj_i8)

    return out_pad[:N, :out_dim]


def gat_ref(h, fc_w, attn_w, adj):
    """Pure-JAX fp32 reference of the same dense-GAT forward."""
    out_dim = fc_w.shape[0]
    z = h @ fc_w.T
    s = z @ attn_w[0, :out_dim]
    d = z @ attn_w[0, out_dim:]
    e = d[:, None] + s[None, :]
    e = jnp.where(e > 0, e, 0.01 * e)
    mask = adj > 0
    e = jnp.where(mask, e, -1e30)
    e = e - e.max(axis=1, keepdims=True)
    p = jnp.exp(e) * mask.astype(jnp.float32)
    return (p / p.sum(axis=1, keepdims=True)) @ z


if __name__ == "__main__":
    N, in_dim, out_dim = 8, 16, 32
    key = jax.random.PRNGKey(0)
    k_h, k_fc, k_attn = jax.random.split(key, 3)

    # nn.init.xavier_normal_ with gain = calculate_gain('relu') = sqrt(2)
    gain = math.sqrt(2.0)

    def xavier_normal(k, shape, gain):
        fan_out, fan_in = shape  # PyTorch Linear weight is (out_features, in_features)
        std = gain * math.sqrt(2.0 / (fan_in + fan_out))
        return std * jax.random.normal(k, shape, dtype=jnp.float32)

    fc_w = xavier_normal(k_fc, (out_dim, in_dim), gain)        # self.fc.weight
    attn_w = xavier_normal(k_attn, (1, 2 * out_dim), gain)     # self.attn_fc.weight
    h = jax.random.normal(k_h, (N, in_dim), dtype=jnp.float32)

    # Deterministic graph `g`: ring + self-loops (every node has >= 1 in-edge,
    # matching DGL's mailbox softmax semantics). adj[dst, src], shipped as int8.
    idx = jnp.arange(N)
    adj = jnp.zeros((N, N), jnp.int8)
    adj = adj.at[idx, idx].set(1)
    adj = adj.at[idx, (idx - 1) % N].set(1)
    adj = adj.at[idx, (idx + 1) % N].set(1)

    out = jax.block_until_ready(jax.jit(gat_layer)(h, fc_w, attn_w, adj))
    ref = gat_ref(h, fc_w, attn_w, adj)
    assert out.shape == (N, out_dim)
    # bf16 MXU matmuls (f32 accumulation) -> slightly looser tolerance than pure-fp32 ref
    assert jnp.allclose(out, ref, atol=5e-2, rtol=5e-2), (
        "kernel mismatch vs reference: max|diff|="
        f"{float(jnp.max(jnp.abs(out - ref))):.3e}")
    print("KERNEL_OK")
</pallas_src>

<mosaic_0001>
module attributes {stable_mosaic.version = 11 : i64} {
  func.func @_proj_kernel(%arg0: i32, %arg1: memref<128x16xbf16, #tpu.memory_space<vmem>>, %arg2: memref<16x128xbf16, #tpu.memory_space<vmem>>, %arg3: memref<1x128xf32, #tpu.memory_space<vmem>>, %arg4: memref<1x128xf32, #tpu.memory_space<vmem>>, %arg5: memref<128x128xbf16, #tpu.memory_space<vmem>>, %arg6: memref<128x1xf32, #tpu.memory_space<vmem>>, %arg7: memref<128x1xf32, #tpu.memory_space<vmem>>) attributes {dimension_semantics = [#tpu.dimension_semantics<parallel>], iteration_bounds = array<i64: 1>, scalar_prefetch = 0 : i64, scratch_operands = 0 : i64, tpu.core_type = #tpu.core_type<tc>, window_params = [{transform_indices = @transform_0, window_bounds = array<i64: 128, 16>}, {pipeline_mode = #tpu.pipeline_mode<synchronous>, transform_indices = @transform_1, window_bounds = array<i64: 16, 128>}, {pipeline_mode = #tpu.pipeline_mode<synchronous>, transform_indices = @transform_2, window_bounds = array<i64: 1, 128>}, {pipeline_mode = #tpu.pipeline_mode<synchronous>, transform_indices = @transform_3, window_bounds = array<i64: 1, 128>}, {transform_indices = @transform_4, window_bounds = array<i64: 128, 128>}, {transform_indices = @transform_5, window_bounds = array<i64: 128, 1>}, {transform_indices = @transform_6, window_bounds = array<i64: 128, 1>}]} {
    %c0 = arith.constant 0 : index
    %c0_0 = arith.constant 0 : index
    %0 = vector.load %arg1[%c0, %c0_0] : memref<128x16xbf16, #tpu.memory_space<vmem>>, vector<128x16xbf16>
    %c0_1 = arith.constant 0 : index
    %c0_2 = arith.constant 0 : index
    %1 = vector.load %arg2[%c0_1, %c0_2] : memref<16x128xbf16, #tpu.memory_space<vmem>>, vector<16x128xbf16>
    %cst = arith.constant dense<0.000000e+00> : vector<128x128xf32>
    %2 = tpu.matmul %0, %1, %cst {dimension_numbers = #tpu.dot_dimension_numbers<[1], [0], [0], [1], [0, 0, 1, 1], [], []>} : vector<128x16xbf16>, vector<16x128xbf16>, vector<128x128xf32> -> vector<128x128xf32>
    %c0_3 = arith.constant 0 : index
    %c0_4 = arith.constant 0 : index
    %3 = vector.load %arg3[%c0_3, %c0_4] : memref<1x128xf32, #tpu.memory_space<vmem>>, vector<1x128xf32>
    %4 = vector.broadcast %3 : vector<1x128xf32> to vector<128x128xf32>
    %5 = arith.mulf %2, %4 : vector<128x128xf32>
    %cst_5 = arith.constant dense<0.000000e+00> : vector<128xf32>
    %6 = vector.multi_reduction <add>, %5, %cst_5 [1] : vector<128x128xf32> to vector<128xf32>
    %7 = vector.shape_cast %6 : vector<128xf32> to vector<128x1xf32>
    %c0_6 = arith.constant 0 : index
    %c0_7 = arith.constant 0 : index
    %8 = vector.load %arg6[%c0_6, %c0_7] : memref<128x1xf32, #tpu.memory_space<vmem>>, vector<128x1xf32>
    tpu.vector_store %arg6[%c0_6, %c0_7], %7 {strides = array<i32>} : memref<128x1xf32, #tpu.memory_space<vmem>>, vector<128x1xf32>,
    %c0_8 = arith.constant 0 : index
    %c0_9 = arith.constant 0 : index
    %9 = vector.load %arg4[%c0_8, %c0_9] : memref<1x128xf32, #tpu.memory_space<vmem>>, vector<1x128xf32>
    %10 = vector.broadcast %9 : vector<1x128xf32> to vector<128x128xf32>
    %11 = arith.mulf %2, %10 : vector<128x128xf32>
    %cst_10 = arith.constant dense<0.000000e+00> : vector<128xf32>
    %12 = vector.multi_reduction <add>, %11, %cst_10 [1] : vector<128x128xf32> to vector<128xf32>
    %13 = vector.shape_cast %12 : vector<128xf32> to vector<128x1xf32>
    %c0_11 = arith.constant 0 : index
    %c0_12 = arith.constant 0 : index
    %14 = vector.load %arg7[%c0_11, %c0_12] : memref<128x1xf32, #tpu.memory_space<vmem>>, vector<128x1xf32>
    tpu.vector_store %arg7[%c0_11, %c0_12], %13 {strides = array<i32>} : memref<128x1xf32, #tpu.memory_space<vmem>>, vector<128x1xf32>,
    %15 = arith.truncf %2 : vector<128x128xf32> to vector<128x128xbf16>
    %c0_13 = arith.constant 0 : index
    %c0_14 = arith.constant 0 : index
    %16 = vector.load %arg5[%c0_13, %c0_14] : memref<128x128xbf16, #tpu.memory_space<vmem>>, vector<128x128xbf16>
    tpu.vector_store %arg5[%c0_13, %c0_14], %15 {strides = array<i32>} : memref<128x128xbf16, #tpu.memory_space<vmem>>, vector<128x128xbf16>,
    return
  }
  func.func @transform_0(%arg0: i32) -> (i32, i32) {
    %c0_i32 = arith.constant 0 : i32
    %c0_i32_0 = arith.constant 0 : i32
    return %arg0, %c0_i32 : i32, i32
  }
  func.func @transform_1(%arg0: i32) -> (i32, i32) {
    %c0_i32 = arith.constant 0 : i32
    %c0_i32_0 = arith.constant 0 : i32
    %c0_i32_1 = arith.constant 0 : i32
    return %c0_i32, %c0_i32_0 : i32, i32
  }
  func.func @transform_2(%arg0: i32) -> (i32, i32) {
    %c0_i32 = arith.constant 0 : i32
    %c0_i32_0 = arith.constant 0 : i32
    %c0_i32_1 = arith.constant 0 : i32
    return %c0_i32, %c0_i32_0 : i32, i32
  }
  func.func @transform_3(%arg0: i32) -> (i32, i32) {
    %c0_i32 = arith.constant 0 : i32
    %c0_i32_0 = arith.constant 0 : i32
    %c0_i32_1 = arith.constant 0 : i32
    return %c0_i32, %c0_i32_0 : i32, i32
  }
  func.func @transform_4(%arg0: i32) -> (i32, i32) {
    %c0_i32 = arith.constant 0 : i32
    %c0_i32_0 = arith.constant 0 : i32
    return %arg0, %c0_i32 : i32, i32
  }
  func.func @transform_5(%arg0: i32) -> (i32, i32) {
    %c0_i32 = arith.constant 0 : i32
    %c0_i32_0 = arith.constant 0 : i32
    return %arg0, %c0_i32 : i32, i32
  }
  func.func @transform_6(%arg0: i32) -> (i32, i32) {
    %c0_i32 = arith.constant 0 : i32
    %c0_i32_0 = arith.constant 0 : i32
    return %arg0, %c0_i32 : i32, i32
  }
}

module attributes {stable_mosaic.version = 11 : i64} {
  func.func @kernel(%arg0: i32, %arg1: i32, %arg2: memref<128x1xf32, #tpu.memory_space<vmem>>, %arg3: memref<1x128xf32, #tpu.memory_space<vmem>>, %arg4: memref<128x128xbf16, #tpu.memory_space<vmem>>, %arg5: memref<128x128xi8, #tpu.memory_space<vmem>>, %arg6: memref<128x128xf32, #tpu.memory_space<vmem>>, %arg7: memref<128x1xf32, #tpu.memory_space<vmem>>, %arg8: memref<128x1xf32, #tpu.memory_space<vmem>>) attributes {dimension_semantics = [#tpu.dimension_semantics<parallel>, #tpu.dimension_semantics<arbitrary>], iteration_bounds = array<i64: 1, 1>, scalar_prefetch = 0 : i64, scratch_operands = 2 : i64, tpu.core_type = #tpu.core_type<tc>, window_params = [{transform_indices = @transform_0, window_bounds = array<i64: 128, 1>}, {transform_indices = @transform_1, window_bounds = array<i64: 1, 128>}, {pipeline_mode = #tpu.pipeline_mode<synchronous>, transform_indices = @transform_2, window_bounds = array<i64: 128, 128>}, {transform_indices = @transform_3, window_bounds = array<i64: 128, 128>}, {transform_indices = @transform_4, window_bounds = array<i64: 128, 128>}]} {
    %c0_i32 = arith.constant 0 : i32
    %0 = arith.cmpi eq, %arg1, %c0_i32 : i32
    %1 = arith.extui %0 : i1 to i32
    %c0_i32_0 = arith.constant 0 : i32
    %2 = arith.cmpi ne, %1, %c0_i32_0 : i32
    scf.if %2 {
      %cst_26 = arith.constant -1.000000e+30 : f32
      %45 = vector.broadcast %cst_26 : f32 to vector<128x1xf32>
      %c0_27 = arith.constant 0 : index
      %c0_28 = arith.constant 0 : index
      %46 = vector.load %arg7[%c0_27, %c0_28] : memref<128x1xf32, #tpu.memory_space<vmem>>, vector<128x1xf32>
      tpu.vector_store %arg7[%c0_27, %c0_28], %45 {strides = array<i32>} : memref<128x1xf32, #tpu.memory_space<vmem>>, vector<128x1xf32>,
      %cst_29 = arith.constant 0.000000e+00 : f32
      %47 = vector.broadcast %cst_29 : f32 to vector<128x1xf32>
      %c0_30 = arith.constant 0 : index
      %c0_31 = arith.constant 0 : index
      %48 = vector.load %arg8[%c0_30, %c0_31] : memref<128x1xf32, #tpu.memory_space<vmem>>, vector<128x1xf32>
      tpu.vector_store %arg8[%c0_30, %c0_31], %47 {strides = array<i32>} : memref<128x1xf32, #tpu.memory_space<vmem>>, vector<128x1xf32>,
      %cst_32 = arith.constant 0.000000e+00 : f32
      %49 = vector.broadcast %cst_32 : f32 to vector<128x128xf32>
      %c0_33 = arith.constant 0 : index
      %c0_34 = arith.constant 0 : index
      %50 = vector.load %arg6[%c0_33, %c0_34] : memref<128x128xf32, #tpu.memory_space<vmem>>, vector<128x128xf32>
      tpu.vector_store %arg6[%c0_33, %c0_34], %49 {strides = array<i32>} : memref<128x128xf32, #tpu.memory_space<vmem>>, vector<128x128xf32>,
    } else {
    }
    %c0 = arith.constant 0 : index
    %c0_1 = arith.constant 0 : index
    %3 = vector.load %arg2[%c0, %c0_1] : memref<128x1xf32, #tpu.memory_space<vmem>>, vector<128x1xf32>
    %c0_2 = arith.constant 0 : index
    %c0_3 = arith.constant 0 : index
    %4 = vector.load %arg3[%c0_2, %c0_3] : memref<1x128xf32, #tpu.memory_space<vmem>>, vector<1x128xf32>
    %5 = vector.broadcast %3 : vector<128x1xf32> to vector<128x128xf32>
    %6 = vector.broadcast %4 : vector<1x128xf32> to vector<128x128xf32>
    %7 = arith.addf %5, %6 : vector<128x128xf32>
    %cst = arith.constant 0.00999999977 : f32
    %8 = vector.broadcast %cst : f32 to vector<128x128xf32>
    %9 = arith.mulf %8, %7 : vector<128x128xf32>
    %10 = arith.maximumf %7, %9 : vector<128x128xf32>
    %cst_4 = arith.constant dense<0xFF800000> : vector<128xf32>
    %11 = vector.multi_reduction <maximumf>, %10, %cst_4 [1] : vector<128x128xf32> to vector<128xf32>
    %12 = vector.shape_cast %11 : vector<128xf32> to vector<128x1xf32>
    %c0_5 = arith.constant 0 : index
    %c0_6 = arith.constant 0 : index
    %13 = vector.load %arg7[%c0_5, %c0_6] : memref<128x1xf32, #tpu.memory_space<vmem>>, vector<128x1xf32>
    %14 = arith.maximumf %13, %12 : vector<128x1xf32>
    %c0_7 = arith.constant 0 : index
    %c0_8 = arith.constant 0 : index
    %15 = vector.load %arg7[%c0_7, %c0_8] : memref<128x1xf32, #tpu.memory_space<vmem>>, vector<128x1xf32>
    %16 = arith.subf %15, %14 : vector<128x1xf32>
    %17 = math.exp %16 : vector<128x1xf32>
    %18 = vector.broadcast %14 : vector<128x1xf32> to vector<128x128xf32>
    %19 = arith.subf %10, %18 : vector<128x128xf32>
    %20 = math.exp %19 : vector<128x128xf32>
    %c0_9 = arith.constant 0 : index
    %c0_10 = arith.constant 0 : index
    %21 = vector.load %arg5[%c0_9, %c0_10] : memref<128x128xi8, #tpu.memory_space<vmem>>, vector<128x128xi8>
    %22 = arith.sitofp %21 : vector<128x128xi8> to vector<128x128xf32>
    %23 = arith.mulf %20, %22 : vector<128x128xf32>
    %c0_11 = arith.constant 0 : index
    %c0_12 = arith.constant 0 : index
    %24 = vector.load %arg8[%c0_11, %c0_12] : memref<128x1xf32, #tpu.memory_space<vmem>>, vector<128x1xf32>
    %25 = arith.mulf %17, %24 : vector<128x1xf32>
    %cst_13 = arith.constant dense<0.000000e+00> : vector<128xf32>
    %26 = vector.multi_reduction <add>, %23, %cst_13 [1] : vector<128x128xf32> to vector<128xf32>
    %27 = vector.shape_cast %26 : vector<128xf32> to vector<128x1xf32>
    %28 = arith.addf %25, %27 : vector<128x1xf32>
    %c0_14 = arith.constant 0 : index
    %c0_15 = arith.constant 0 : index
    %29 = vector.load %arg8[%c0_14, %c0_15] : memref<128x1xf32, #tpu.memory_space<vmem>>, vector<128x1xf32>
    tpu.vector_store %arg8[%c0_14, %c0_15], %28 {strides = array<i32>} : memref<128x1xf32, #tpu.memory_space<vmem>>, vector<128x1xf32>,
    %c128_i32 = arith.constant 128 : i32
    %30 = arith.muli %arg1, %c128_i32 : i32
    %31 = tpu.assume_multiple %30, 128 : i32
    %32 = arith.index_cast %31 : i32 to index
    %c0_16 = arith.constant 0 : index
    %33 = vector.load %arg4[%32, %c0_16] : memref<128x128xbf16, #tpu.memory_space<vmem>>, vector<128x128xbf16>
    %c0_17 = arith.constant 0 : index
    %c0_18 = arith.constant 0 : index
    %34 = vector.load %arg6[%c0_17, %c0_18] : memref<128x128xf32, #tpu.memory_space<vmem>>, vector<128x128xf32>
    %35 = vector.broadcast %17 : vector<128x1xf32> to vector<128x128xf32>
    %36 = arith.mulf %35, %34 : vector<128x128xf32>
    %37 = arith.truncf %23 : vector<128x128xf32> to vector<128x128xbf16>
    %cst_19 = arith.constant dense<0.000000e+00> : vector<128x128xf32>
    %38 = tpu.matmul %37, %33, %cst_19 {dimension_numbers = #tpu.dot_dimension_numbers<[1], [0], [0], [1], [0, 0, 1, 1], [], []>} : vector<128x128xbf16>, vector<128x128xbf16>, vector<128x128xf32> -> vector<128x128xf32>
    %39 = arith.addf %36, %38 : vector<128x128xf32>
    %c0_20 = arith.constant 0 : index
    %c0_21 = arith.constant 0 : index
    %40 = vector.load %arg6[%c0_20, %c0_21] : memref<128x128xf32, #tpu.memory_space<vmem>>, vector<128x128xf32>
    tpu.vector_store %arg6[%c0_20, %c0_21], %39 {strides = array<i32>} : memref<128x128xf32, #tpu.memory_space<vmem>>, vector<128x128xf32>,
    %c0_22 = arith.constant 0 : index
    %c0_23 = arith.constant 0 : index
    %41 = vector.load %arg7[%c0_22, %c0_23] : memref<128x1xf32, #tpu.memory_space<vmem>>, vector<128x1xf32>
    tpu.vector_store %arg7[%c0_22, %c0_23], %14 {strides = array<i32>} : memref<128x1xf32, #tpu.memory_space<vmem>>, vector<128x1xf32>,
    %c0_i32_24 = arith.constant 0 : i32
    %42 = arith.cmpi eq, %arg1, %c0_i32_24 : i32
    %43 = arith.extui %42 : i1 to i32
    %c0_i32_25 = arith.constant 0 : i32
    %44 = arith.cmpi ne, %43, %c0_i32_25 : i32
    scf.if %44 {
      %c0_26 = arith.constant 0 : index
      %c0_27 = arith.constant 0 : index
      %45 = vector.load %arg8[%c0_26, %c0_27] : memref<128x1xf32, #tpu.memory_space<vmem>>, vector<128x1xf32>
      %cst_28 = arith.constant 1.000000e-30 : f32
      %46 = vector.broadcast %cst_28 : f32 to vector<128x1xf32>
      %47 = arith.maximumf %45, %46 : vector<128x1xf32>
      %48 = tpu.reciprocal %47 {approx = true} : vector<128x1xf32> -> vector<128x1xf32>
      %c0_29 = arith.constant 0 : index
      %c0_30 = arith.constant 0 : index
      %49 = vector.load %arg6[%c0_29, %c0_30] : memref<128x128xf32, #tpu.memory_space<vmem>>, vector<128x128xf32>
      %50 = vector.broadcast %48 : vector<128x1xf32> to vector<128x128xf32>
      %51 = arith.mulf %49, %50 : vector<128x128xf32>
      %c0_31 = arith.constant 0 : index
      %c0_32 = arith.constant 0 : index
      %52 = vector.load %arg6[%c0_31, %c0_32] : memref<128x128xf32, #tpu.memory_space<vmem>>, vector<128x128xf32>
      tpu.vector_store %arg6[%c0_31, %c0_32], %51 {strides = array<i32>} : memref<128x128xf32, #tpu.memory_space<vmem>>, vector<128x128xf32>,
    } else {
    }
    return
  }
  func.func @transform_0(%arg0: i32, %arg1: i32) -> (i32, i32) {
    %c0_i32 = arith.constant 0 : i32
    %c0_i32_0 = arith.constant 0 : i32
    return %arg0, %c0_i32 : i32, i32
  }
  func.func @transform_1(%arg0: i32, %arg1: i32) -> (i32, i32) {
    %c0_i32 = arith.constant 0 : i32
    %c0_i32_0 = arith.constant 0 : i32
    return %c0_i32, %arg1 : i32, i32
  }
  func.func @transform_2(%arg0: i32, %arg1: i32) -> (i32, i32) {
    %c0_i32 = arith.constant 0 : i32
    %c0_i32_0 = arith.constant 0 : i32
    %c0_i32_1 = arith.constant 0 : i32
    return %c0_i32, %c0_i32_0 : i32, i32
  }
  func.func @transform_3(%arg0: i32, %arg1: i32) -> (i32, i32) {
    %c0_i32 = arith.constant 0 : i32
    return %arg0, %arg1 : i32, i32
  }
  func.func @transform_4(%arg0: i32, %arg1: i32) -> (i32, i32) {
    %c0_i32 = arith.constant 0 : i32
    %c0_i32_0 = arith.constant 0 : i32
    return %arg0, %c0_i32 : i32, i32
  }
}

</mosaic_0001>

<bundles_post_ra>
// kernel: gat_layer.2
= control target key start
LH: loop header
LB: loop body
LE: loop exit
PB: predicated region body
PF: predicated region fallthrough
CT: control target
= control target key end

     0   :  { %vm85_vm0 = vcmask 130048   ;;  %vm262_vm1 = vcmask 7168   ;;  %s847_s1 = inlined_call_operand.vmem [shape: bf16[16,128], index: 1, kind: input, shape index: {}]   ;;  %s848_s0 = inlined_call_operand.vmem [shape: bf16[128,16], index: 0, kind: input, shape index: {}]   ;;  %s849_s2 = inlined_call_operand.vmem [shape: f32[1,128], index: 2, kind: input, shape index: {}]   ;;  %s850_s3 = inlined_call_operand.vmem [shape: f32[1,128], index: 3, kind: input, shape index: {}]   ;;  %s851_s4 = inlined_call_operand.vmem [shape: bf16[128,128], index: 4, kind: output, shape index: {0}]   ;;  %s852_s5 = inlined_call_operand.vmem [shape: f32[128,1], index: 5, kind: output, shape index: {1}]   ;;  %s853_s6 = inlined_call_operand.vmem [shape: f32[128,1], index: 6, kind: output, shape index: {2}]  }
   0x1   :  { %v569_v0 = vld [vmem:[%s847_s1] sm:$0xff]   ;;  %v572_v3 = vld [vmem:[%s848_s0 + $0x8] sm:$0xff]   ;;  %v574_v5 = vld [vmem:[%s848_s0 + $0x10] sm:$0xff]  }
   0x2   :  { %v570_v1 = vld [vmem:[%s848_s0] sm:$0xff]   ;;  %549 = vmatprep.subr.bf16.mxu0 %v569_v0  ;;  %567 = vmatprep.subr.bf16.mxu1 %v569_v0  ;;  %v573_v4 = vld [vmem:[%s848_s0 + $0x28] sm:$0xff]   ;;  %v576_v6 = vld [vmem:[%s848_s0 + $0x30] sm:$0xff]  }
   0x3   :  { %v571_v2 = vld [vmem:[%s848_s0 + $0x20] sm:$0xff]   ;;  %550 = vmatpush3.bf16.msra.mxu0 %v569_v0  ;;  %568 = vmatpush3.bf16.msra.mxu1 %v569_v0  ;;  %v575_v7 = vld [vmem:[%s848_s0 + $0x18] sm:$0xff]  }
   0x4   :  { %551 = vmatprep.mubr.msk.bf16.mxu0 %vm85_vm0, %v570_v1  ;;  %559 = vmatprep.mubr.msk.bf16.mxu1 %vm85_vm0, %v571_v2  ;;  %v577_v8 = vld [vmem:[%s848_s0 + $0x38] sm:$0xff]   ;;  %v651_v9 = vld [vmem:[%s849_s2] ss:$0 sm:$0xff] }
   0x5   :  { %v658_v18 = vld [vmem:[%s850_s3] ss:$0 sm:$0xff] }
   0x6   :  { %552 = vmatmul.mubr.msk.bf16.vlgmr.msra.gmra.mrb[0].mxu0 %vm85_vm0, %v572_v3  ;;  %560 = vmatmul.mubr.msk.bf16.vlgmr.msra.gmra.mrb[0].mxu1 %vm85_vm0, %v573_v4 }
   0x7   :  { %555 = vmatprep.mubr.msk.bf16.mxu0 %vm85_vm0, %v574_v5  ;;  %563 = vmatprep.mubr.msk.bf16.mxu1 %vm85_vm0, %v576_v6 }
   0xe   :  { %556 = vmatmul.mubr.msk.bf16.gmra.mrb[4].mxu0 %vm85_vm0, %v575_v7  ;;  %564 = vmatmul.mubr.msk.bf16.gmra.mrb[4].mxu1 %vm85_vm0, %v577_v8 }
  0xd9   :  { %v553_v10 = vpop.f32.mrb[0].mxu0  ;;  %v561_v11 = vpop.f32.mrb[0].mxu1 }
  0xda   :  { %v144_v12 = vpop.f32.mrb[1].mxu0  ;;  %v176_v13 = vpop.f32.mrb[1].mxu1  ;;  %v224_v14 = vmul.f32 %v561_v11, %v651_v9  ;;  %v216_v15 = vmul.f32 %v553_v10, %v651_v9  ;;  %v288_v25 = vmul.f32 %v553_v10, %v658_v18  ;;  %v296_v29 = vmul.f32 %v561_v11, %v658_v18 }
  0xdb   :  { %v554_v16 = vpop.f32.mrb[2].mxu0  ;;  %v562_v17 = vpop.f32.mrb[2].mxu1  ;;  %v214_v41 = vmul.f32 %v651_v9, %v144_v12  ;;  %v222_v43 = vmul.f32 %v651_v9, %v176_v13  ;;  %v286_v45 = vmul.f32 %v658_v18, %v144_v12  ;;  %v294_v47 = vmul.f32 %v658_v18, %v176_v13 }
  0xdc   :  { %v501_v19 = vpack.c.bf16 %v554_v16, %v553_v10  ;;  %v521_v20 = vpack.c.bf16 %v562_v17, %v561_v11  ;;  %250 = vadd.xlane.f32.xlu0 %v224_v14  ;;  %v179_v21 = vpop.f32.mrb[3].mxu1  ;;  %234 = vadd.xlane.f32.xlu1 %v216_v15  ;;  %v147_v22 = vpop.f32.mrb[3].mxu0  ;;  %v217_v26 = vmul.f32 %v554_v16, %v651_v9 }
  0xdd   :  { %v516_v23 = vpack.c.bf16 %v179_v21, %v176_v13  ;;  %v496_v24 = vpack.c.bf16 %v147_v22, %v144_v12  ;;  %v225_v30 = vmul.f32 %v562_v17, %v651_v9  ;;  %v289_v42 = vmul.f32 %v554_v16, %v658_v18 }
  0xde   :  { %533 = vst [vmem:[%s851_s4 + $0x8] sm:$0xff] %v501_v19   ;;  %537 = vst [vmem:[%s851_s4 + $0x28] sm:$0xff] %v521_v20   ;;  %v297_v44 = vmul.f32 %v562_v17, %v658_v18  ;;  %v223_v46 = vmul.f32 %v651_v9, %v179_v21  ;;  %v287_v48 = vmul.f32 %v658_v18, %v147_v22 }
  0xdf   :  { %536 = vst [vmem:[%s851_s4 + $0x20] sm:$0xff] %v516_v23   ;;  %497 = vst [vmem:[%s851_s4] sm:$0xff] %v496_v24   ;;  %v295_v49 = vmul.f32 %v658_v18, %v179_v21  ;;  %v215_v50 = vmul.f32 %v651_v9, %v147_v22 }
  0xe0   :  { %306 = vadd.xlane.f32.xlu0 %v288_v25  ;;  %236 = vadd.xlane.f32.xlu1 %v217_v26 }
  0xe1   :  { %v557_v27 = vpop.f32.mrb[4].mxu0  ;;  %v674_v28 = vpop.f32.mrb[4].mxu1 }
  0xe2   :  { %v160_v31 = vpop.f32.mrb[5].mxu0  ;;  %v192_v32 = vpop.f32.mrb[5].mxu1  ;;  %v220_v51 = vmul.f32 %v557_v27, %v651_v9  ;;  %v228_v53 = vmul.f32 %v674_v28, %v651_v9  ;;  %v292_v55 = vmul.f32 %v557_v27, %v658_v18  ;;  %v300_v1 = vmul.f32 %v674_v28, %v658_v18 }
  0xe3   :  { %v558_v33 = vpop.f32.mrb[6].mxu0  ;;  %v566_v34 = vpop.f32.mrb[6].mxu1  ;;  %v218_v57 = vmul.f32 %v651_v9, %v160_v31  ;;  %v226_v59 = vmul.f32 %v651_v9, %v192_v32  ;;  %v290_v61 = vmul.f32 %v658_v18, %v160_v31  ;;  %v298_v63 = vmul.f32 %v658_v18, %v192_v32 }
  0xe4   :  { %322 = vadd.xlane.f32.xlu0 %v296_v29  ;;  %252 = vadd.xlane.f32.xlu1 %v225_v30  ;;  %v511_v35 = vpack.c.bf16 %v558_v33, %v557_v27  ;;  %v163_v36 = vpop.f32.mrb[7].mxu0  ;;  %v531_v37 = vpack.c.bf16 %v566_v34, %v674_v28  ;;  %v195_v38 = vpop.f32.mrb[7].mxu1  ;;  %v221_v52 = vmul.f32 %v558_v33, %v651_v9 }
  0xe5   :  { %v506_v39 = vpack.c.bf16 %v163_v36, %v160_v31  ;;  %v526_v40 = vpack.c.bf16 %v195_v38, %v192_v32  ;;  %v229_v54 = vmul.f32 %v566_v34, %v651_v9  ;;  %v293_v56 = vmul.f32 %v558_v33, %v658_v18 }
  0xe6   :  { %535 = vst [vmem:[%s851_s4 + $0x18] sm:$0xff] %v511_v35   ;;  %539 = vst [vmem:[%s851_s4 + $0x38] sm:$0xff] %v531_v37   ;;  %v219_v58 = vmul.f32 %v651_v9, %v163_v36  ;;  %v227_v60 = vmul.f32 %v651_v9, %v195_v38  ;;  %v291_v62 = vmul.f32 %v658_v18, %v163_v36 }
  0xe7   :  { %534 = vst [vmem:[%s851_s4 + $0x10] sm:$0xff] %v506_v39   ;;  %538 = vst [vmem:[%s851_s4 + $0x30] sm:$0xff] %v526_v40   ;;  %v299_v0 = vmul.f32 %v658_v18, %v195_v38  ;;  %v301_v2 = vmul.f32 %v566_v34, %v658_v18 }
  0xe8   :  { %230 = vadd.xlane.f32.xlu0 %v214_v41  ;;  %308 = vadd.xlane.f32.xlu1 %v289_v42 }
  0xec   :  { %246 = vadd.xlane.f32.xlu0 %v222_v43  ;;  %324 = vadd.xlane.f32.xlu1 %v297_v44 }
  0xf0   :  { %302 = vadd.xlane.f32.xlu0 %v286_v45  ;;  %248 = vadd.xlane.f32.xlu1 %v223_v46 }
  0xf4   :  { %318 = vadd.xlane.f32.xlu0 %v294_v47  ;;  %304 = vadd.xlane.f32.xlu1 %v287_v48 }
  0xf8   :  { %320 = vadd.xlane.f32.xlu1 %v295_v49  ;;  %232 = vadd.xlane.f32.xlu0 %v215_v50 }
  0xfc   :  { %242 = vadd.xlane.f32.xlu0 %v220_v51  ;;  %244 = vadd.xlane.f32.xlu1 %v221_v52 }
 0x100   :  { %258 = vadd.xlane.f32.xlu0 %v228_v53  ;;  %260 = vadd.xlane.f32.xlu1 %v229_v54 }
 0x104   :  { %314 = vadd.xlane.f32.xlu0 %v292_v55  ;;  %316 = vadd.xlane.f32.xlu1 %v293_v56 }
 0x108   :  { %238 = vadd.xlane.f32.xlu0 %v218_v57  ;;  %240 = vadd.xlane.f32.xlu1 %v219_v58 }
 0x10c   :  { %254 = vadd.xlane.f32.xlu0 %v226_v59  ;;  %256 = vadd.xlane.f32.xlu1 %v227_v60 }
 0x110   :  { %310 = vadd.xlane.f32.xlu0 %v290_v61  ;;  %312 = vadd.xlane.f32.xlu1 %v291_v62 }
 0x114   :  { %326 = vadd.xlane.f32.xlu0 %v298_v63  ;;  %328 = vadd.xlane.f32.xlu1 %v299_v0 }
 0x118   :  { %330 = vadd.xlane.f32.xlu0 %v300_v1  ;;  %332 = vadd.xlane.f32.xlu1 %v301_v2 }
 0x169   :  { %v251_v3 = vpop.xlane.xlu0 %250  ;;  %v235_v4 = vpop.xlane.xlu1 %234 }
 0x16a   :  { %273 = vst.msk [vmem:[%s852_s5 + $0x50] sm:$0xff] %vm262_vm1, %v251_v3  ;;  %265 = vst.msk [vmem:[%s852_s5 + $0x10] sm:$0xff] %vm262_vm1, %v235_v4 }
 0x16d   :  { %v307_v5 = vpop.xlane.xlu0 %306  ;;  %v237_v6 = vpop.xlane.xlu1 %236 }
 0x16e   :  { %336 = vst.msk [vmem:[%s853_s6 + $0x10] sm:$0xff] %vm262_vm1, %v307_v5  ;;  %266 = vst.msk [vmem:[%s852_s5 + $0x18] sm:$0xff] %vm262_vm1, %v237_v6 }
 0x171   :  { %v323_v7 = vpop.xlane.xlu0 %322  ;;  %v253_v8 = vpop.xlane.xlu1 %252 }
 0x172   :  { %344 = vst.msk [vmem:[%s853_s6 + $0x50] sm:$0xff] %vm262_vm1, %v323_v7  ;;  %274 = vst.msk [vmem:[%s852_s5 + $0x58] sm:$0xff] %vm262_vm1, %v253_v8 }
 0x175   :  { %v231_v9 = vpop.xlane.xlu0 %230  ;;  %v309_v10 = vpop.xlane.xlu1 %308 }
 0x176   :  { %263 = vst.msk [vmem:[%s852_s5] sm:$0xff] %vm262_vm1, %v231_v9  ;;  %337 = vst.msk [vmem:[%s853_s6 + $0x18] sm:$0xff] %vm262_vm1, %v309_v10 }
 0x179   :  { %v247_v11 = vpop.xlane.xlu0 %246  ;;  %v325_v12 = vpop.xlane.xlu1 %324 }
 0x17a   :  { %271 = vst.msk [vmem:[%s852_s5 + $0x40] sm:$0xff] %vm262_vm1, %v247_v11  ;;  %345 = vst.msk [vmem:[%s853_s6 + $0x58] sm:$0xff] %vm262_vm1, %v325_v12 }
 0x17d   :  { %v303_v13 = vpop.xlane.xlu0 %302  ;;  %v249_v14 = vpop.xlane.xlu1 %248 }
 0x17e   :  { %334 = vst.msk [vmem:[%s853_s6] sm:$0xff] %vm262_vm1, %v303_v13  ;;  %272 = vst.msk [vmem:[%s852_s5 + $0x48] sm:$0xff] %vm262_vm1, %v249_v14 }
 0x181   :  { %v319_v15 = vpop.xlane.xlu0 %318  ;;  %v305_v16 = vpop.xlane.xlu1 %304 }
 0x182   :  { %342 = vst.msk [vmem:[%s853_s6 + $0x40] sm:$0xff] %vm262_vm1, %v319_v15  ;;  %335 = vst.msk [vmem:[%s853_s6 + $0x8] sm:$0xff] %vm262_vm1, %v305_v16 }
 0x185   :  { %v321_v17 = vpop.xlane.xlu1 %320  ;;  %v233_v18 = vpop.xlane.xlu0 %232 }
 0x186   :  { %343 = vst.msk [vmem:[%s853_s6 + $0x48] sm:$0xff] %vm262_vm1, %v321_v17  ;;  %264 = vst.msk [vmem:[%s852_s5 + $0x8] sm:$0xff] %vm262_vm1, %v233_v18 }
 0x189   :  { %v243_v19 = vpop.xlane.xlu0 %242  ;;  %v245_v20 = vpop.xlane.xlu1 %244 }
 0x18a   :  { %269 = vst.msk [vmem:[%s852_s5 + $0x30] sm:$0xff] %vm262_vm1, %v243_v19  ;;  %270 = vst.msk [vmem:[%s852_s5 + $0x38] sm:$0xff] %vm262_vm1, %v245_v20 }
 0x18d   :  { %v259_v21 = vpop.xlane.xlu0 %258  ;;  %v261_v22 = vpop.xlane.xlu1 %260 }
 0x18e   :  { %277 = vst.msk [vmem:[%s852_s5 + $0x70] sm:$0xff] %vm262_vm1, %v259_v21  ;;  %278 = vst.msk [vmem:[%s852_s5 + $0x78] sm:$0xff] %vm262_vm1, %v261_v22 }
 0x191   :  { %v315_v23 = vpop.xlane.xlu0 %314  ;;  %v317_v24 = vpop.xlane.xlu1 %316 }
 0x192   :  { %340 = vst.msk [vmem:[%s853_s6 + $0x30] sm:$0xff] %vm262_vm1, %v315_v23  ;;  %341 = vst.msk [vmem:[%s853_s6 + $0x38] sm:$0xff] %vm262_vm1, %v317_v24 }
 0x195   :  { %v239_v25 = vpop.xlane.xlu0 %238  ;;  %v241_v26 = vpop.xlane.xlu1 %240 }
 0x196   :  { %267 = vst.msk [vmem:[%s852_s5 + $0x20] sm:$0xff] %vm262_vm1, %v239_v25  ;;  %268 = vst.msk [vmem:[%s852_s5 + $0x28] sm:$0xff] %vm262_vm1, %v241_v26 }
 0x199   :  { %v255_v27 = vpop.xlane.xlu0 %254  ;;  %v257_v28 = vpop.xlane.xlu1 %256 }
 0x19a   :  { %275 = vst.msk [vmem:[%s852_s5 + $0x60] sm:$0xff] %vm262_vm1, %v255_v27  ;;  %276 = vst.msk [vmem:[%s852_s5 + $0x68] sm:$0xff] %vm262_vm1, %v257_v28 }
 0x19d   :  { %v311_v29 = vpop.xlane.xlu0 %310  ;;  %v313_v30 = vpop.xlane.xlu1 %312 }
 0x19e   :  { %338 = vst.msk [vmem:[%s853_s6 + $0x20] sm:$0xff] %vm262_vm1, %v311_v29  ;;  %339 = vst.msk [vmem:[%s853_s6 + $0x28] sm:$0xff] %vm262_vm1, %v313_v30 }
 0x1a1   :  { %v327_v31 = vpop.xlane.xlu0 %326  ;;  %v329_v32 = vpop.xlane.xlu1 %328 }
 0x1a2   :  { %346 = vst.msk [vmem:[%s853_s6 + $0x60] sm:$0xff] %vm262_vm1, %v327_v31  ;;  %347 = vst.msk [vmem:[%s853_s6 + $0x68] sm:$0xff] %vm262_vm1, %v329_v32 }
 0x1a5   :  { %v331_v33 = vpop.xlane.xlu0 %330  ;;  %v333_v34 = vpop.xlane.xlu1 %332 }
 0x1a6   :  { %348 = vst.msk [vmem:[%s853_s6 + $0x70] sm:$0xff] %vm262_vm1, %v331_v33  ;;  %349 = vst.msk [vmem:[%s853_s6 + $0x78] sm:$0xff] %vm262_vm1, %v333_v34 }

// kernel: gat_layer.3
= control target key start
LH: loop header
LB: loop body
LE: loop exit
PB: predicated region body
PF: predicated region fallthrough
CT: control target
= control target key end

     0   :  { %v1312_v0 = vmov 0   ;;  %vm22_vm0 = vcmask 7168   ;;  %v1313_v17 = vmov -1e+30   ;;  %s1910_s0 = inlined_call_operand.vmem [shape: f32[128,1], index: 0, kind: input, shape index: {}]   ;;  %s1911_s1 = inlined_call_operand.vmem [shape: f32[1,128], index: 1, kind: input, shape index: {}]   ;;  %s1912_s2 = inlined_call_operand.vmem [shape: bf16[128,128], index: 2, kind: input, shape index: {}]   ;;  %s1913_s3 = inlined_call_operand.vmem [shape: s8[128,128], index: 3, kind: input, shape index: {}]   ;;  %s1914_s4 = inlined_call_operand.vmem [shape: f32[128,128], index: 4, kind: output, shape index: {}]  }
   0x1   :  { %1207 = vset.pattern.permute.xlu1 %v1312_v0  ;;  %1206 = vset.pattern.permute.xlu0 %v1312_v0  ;;  %v79_v1 = vld [vmem:[%s1910_s0 + $0x40] sm:$0xff]  ;;  %v80_v3 = vld [vmem:[%s1910_s0 + $0x48] sm:$0xff]  ;;  %v74_v5 = vld [vmem:[%s1910_s0 + $0x18] sm:$0xff]  ;;  %23 = vst.msk [vmem:[#allocation2] sm:$0xff] %vm22_vm0, %v1313_v17 }
   0x2   :  { %v71_v2 = vld [vmem:[%s1910_s0] sm:$0xff]  ;;  %130 = vperm.xlu1 %1207, %v79_v1   ;;  %v72_v4 = vld [vmem:[%s1910_s0 + $0x8] sm:$0xff]  ;;  %v73_v6 = vld [vmem:[%s1910_s0 + $0x10] sm:$0xff]  ;;  %24 = vst.msk [vmem:[#allocation2 + $0x8] sm:$0xff] %vm22_vm0, %v1313_v17 }
   0x3   :  { %90 = vperm.xlu0 %1206, %v71_v2   ;;  %v82_v7 = vld [vmem:[%s1910_s0 + $0x58] sm:$0xff]  ;;  %v81_v8 = vld [vmem:[%s1910_s0 + $0x50] sm:$0xff]  ;;  %v76_v9 = vld [vmem:[%s1910_s0 + $0x28] sm:$0xff]  ;;  %25 = vst.msk [vmem:[#allocation2 + $0x10] sm:$0xff] %vm22_vm0, %v1313_v17 }
   0x4   :  { %v75_v10 = vld [vmem:[%s1910_s0 + $0x20] sm:$0xff]  ;;  %v84_v11 = vld [vmem:[%s1910_s0 + $0x68] sm:$0xff]  ;;  %v78_v13 = vld [vmem:[%s1910_s0 + $0x38] sm:$0xff]  ;;  %26 = vst.msk [vmem:[#allocation2 + $0x18] sm:$0xff] %vm22_vm0, %v1313_v17 }
   0x5   :  { %v83_v12 = vld [vmem:[%s1910_s0 + $0x60] sm:$0xff]  ;;  %v77_v14 = vld [vmem:[%s1910_s0 + $0x30] sm:$0xff]  ;;  %v86_v15 = vld [vmem:[%s1910_s0 + $0x78] sm:$0xff]  ;;  %27 = vst.msk [vmem:[#allocation2 + $0x20] sm:$0xff] %vm22_vm0, %v1313_v17 }
   0x6   :  { %135 = vperm.xlu1 %1207, %v80_v3   ;;  %v85_v16 = vld [vmem:[%s1910_s0 + $0x70] sm:$0xff]  ;;  %28 = vst.msk [vmem:[#allocation2 + $0x28] sm:$0xff] %vm22_vm0, %v1313_v17  ;;  %29 = vst.msk [vmem:[#allocation2 + $0x30] sm:$0xff] %vm22_vm0, %v1313_v17  ;;  %v1407_v18 = vld [vmem:[%s1911_s1] ss:$0 sm:$0xff] }
   0x7   :  { %95 = vperm.xlu0 %1206, %v72_v4   ;;  %30 = vst.msk [vmem:[#allocation2 + $0x38] sm:$0xff] %vm22_vm0, %v1313_v17  ;;  %31 = vst.msk [vmem:[#allocation2 + $0x40] sm:$0xff] %vm22_vm0, %v1313_v17 }
   0x8   :  { %32 = vst.msk [vmem:[#allocation2 + $0x48] sm:$0xff] %vm22_vm0, %v1313_v17  ;;  %33 = vst.msk [vmem:[#allocation2 + $0x50] sm:$0xff] %vm22_vm0, %v1313_v17 }
   0x9   :  { %34 = vst.msk [vmem:[#allocation2 + $0x58] sm:$0xff] %vm22_vm0, %v1313_v17  ;;  %35 = vst.msk [vmem:[#allocation2 + $0x60] sm:$0xff] %vm22_vm0, %v1313_v17 }
   0xa   :  { %105 = vperm.xlu1 %1207, %v74_v5   ;;  %36 = vst.msk [vmem:[#allocation2 + $0x68] sm:$0xff] %vm22_vm0, %v1313_v17  ;;  %37 = vst.msk [vmem:[#allocation2 + $0x70] sm:$0xff] %vm22_vm0, %v1313_v17 }
   0xb   :  { %100 = vperm.xlu0 %1206, %v73_v6   ;;  %38 = vst.msk [vmem:[#allocation2 + $0x78] sm:$0xff] %vm22_vm0, %v1313_v17 }
   0xe   :  { %145 = vperm.xlu1 %1207, %v82_v7  }
   0xf   :  { %140 = vperm.xlu0 %1206, %v81_v8  }
  0x12   :  { %115 = vperm.xlu1 %1207, %v76_v9  }
  0x13   :  { %110 = vperm.xlu0 %1206, %v75_v10  }
  0x16   :  { %155 = vperm.xlu1 %1207, %v84_v11  }
  0x17   :  { %150 = vperm.xlu0 %1206, %v83_v12  }
  0x1a   :  { %125 = vperm.xlu1 %1207, %v78_v13  }
  0x1b   :  { %120 = vperm.xlu0 %1206, %v77_v14  }
  0x1e   :  { %165 = vperm.xlu1 %1207, %v86_v15   ;;  %v1314_v15 = vmov 0.0  }
  0x1f   :  { %160 = vperm.xlu0 %1206, %v85_v16   ;;  %39 = vst.msk [vmem:[#allocation3] sm:$0xff] %vm22_vm0, %v1314_v15  ;;  %40 = vst.msk [vmem:[#allocation3 + $0x8] sm:$0xff] %vm22_vm0, %v1314_v15 }
  0x20   :  { %41 = vst.msk [vmem:[#allocation3 + $0x10] sm:$0xff] %vm22_vm0, %v1314_v15  ;;  %42 = vst.msk [vmem:[#allocation3 + $0x18] sm:$0xff] %vm22_vm0, %v1314_v15 }
  0x21   :  { %43 = vst.msk [vmem:[#allocation3 + $0x20] sm:$0xff] %vm22_vm0, %v1314_v15  ;;  %44 = vst.msk [vmem:[#allocation3 + $0x28] sm:$0xff] %vm22_vm0, %v1314_v15 }
  0x22   :  { %45 = vst.msk [vmem:[#allocation3 + $0x30] sm:$0xff] %vm22_vm0, %v1314_v15  ;;  %46 = vst.msk [vmem:[#allocation3 + $0x38] sm:$0xff] %vm22_vm0, %v1314_v15 }
  0x23   :  { %47 = vst.msk [vmem:[#allocation3 + $0x40] sm:$0xff] %vm22_vm0, %v1314_v15  ;;  %48 = vst.msk [vmem:[#allocation3 + $0x48] sm:$0xff] %vm22_vm0, %v1314_v15 }
  0x24   :  { %49 = vst.msk [vmem:[#allocation3 + $0x50] sm:$0xff] %vm22_vm0, %v1314_v15  ;;  %50 = vst.msk [vmem:[#allocation3 + $0x58] sm:$0xff] %vm22_vm0, %v1314_v15 }
  0x25   :  { %51 = vst.msk [vmem:[#allocation3 + $0x60] sm:$0xff] %vm22_vm0, %v1314_v15  ;;  %52 = vst.msk [vmem:[#allocation3 + $0x68] sm:$0xff] %vm22_vm0, %v1314_v15 }
  0x26   :  { %53 = vst.msk [vmem:[#allocation3 + $0x70] sm:$0xff] %vm22_vm0, %v1314_v15  ;;  %54 = vst.msk [vmem:[#allocation3 + $0x78] sm:$0xff] %vm22_vm0, %v1314_v15 }
  0x81   :  { %v131_v19 = vpop.permute.xlu1 %130 }
  0x82   :  { %v91_v20 = vpop.permute.xlu0 %90  ;;  %v182_v21 = vadd.f32 %v1407_v18, %v131_v19 }
  0x83   :  { %v174_v22 = vadd.f32 %v1407_v18, %v91_v20  ;;  %v1208_v20 = vld [vmem:[%s1912_s2] sm:$0xff]  }
  0x84   :  { %v198_v26 = vmul.f32 0.01, %v182_v21  ;;  %1155 = vmatprep.subr.bf16.mxu0 %v1208_v20  ;;  %1187 = vmatprep.subr.bf16.mxu1 %v1208_v20 }
  0x85   :  { %v190_v23 = vmul.f32 0.01, %v174_v22  ;;  %v136_v24 = vpop.permute.xlu1 %135  ;;  %1156 = vmatpush3.bf16.msra.mxu0 %v1208_v20  ;;  %1195 = vmatpush3.bf16.msra.mxu1 %v1208_v20  ;;  %v1607_v20 = vld [vmem:[#allocation2 + $0x30] sm:$0xff] }
  0x86   :  { %v96_v25 = vpop.permute.xlu0 %95  ;;  %v183_v27 = vadd.f32 %v1407_v18, %v136_v24  ;;  %v1418_v36 = vmax.f32 %v182_v21, %v198_v26  ;;  %v1492_v21 = vld [vmem:[#allocation2] sm:$0xff]  ;;  %v1497_v24 = vld [vmem:[#allocation2 + $0x8] sm:$0xff] }
  0x87   :  { %v175_v28 = vadd.f32 %v1407_v18, %v96_v25  ;;  %v1413_v29 = vmax.f32 %v174_v22, %v190_v23  ;;  %v1499_v25 = vld [vmem:[#allocation2 + $0x40] sm:$0xff] }
  0x88   :  { %v199_v31 = vmul.f32 0.01, %v183_v27 }
  0x89   :  { %v191_v30 = vmul.f32 0.01, %v175_v28  ;;  %222 = vmax.xlane.f32.xlu0 %v1413_v29  ;;  %v106_v32 = vpop.permute.xlu1 %105 }
  0x8a   :  { %v101_v33 = vpop.permute.xlu0 %100  ;;  %v177_v34 = vadd.f32 %v1407_v18, %v106_v32  ;;  %v1424_v41 = vmax.f32 %v183_v27, %v199_v31  ;;  %v1209_v32 = vld [vmem:[%s1912_s2 + $0x8] sm:$0xff]  }
  0x8b   :  { %v176_v35 = vadd.f32 %v1407_v18, %v101_v33  ;;  %v1420_v37 = vmax.f32 %v175_v28, %v191_v30  ;;  %v1515_v33 = vld [vmem:[#allocation2 + $0x10] sm:$0xff]  ;;  %1157 = vmatprep.subr.bf16.mxu0 %v1209_v32  ;;  %1188 = vmatprep.subr.bf16.mxu1 %v1209_v32 }
  0x8c   :  { %v193_v42 = vmul.f32 0.01, %v177_v34  ;;  %1158 = vmatpush3.bf16.msra.mxu0 %v1209_v32  ;;  %1196 = vmatpush3.bf16.msra.mxu1 %v1209_v32 }
  0x8d   :  { %v192_v38 = vmul.f32 0.01, %v176_v35  ;;  %238 = vmax.xlane.f32.xlu0 %v1418_v36  ;;  %224 = vmax.xlane.f32.xlu1 %v1420_v37  ;;  %v146_v39 = vpop.permute.xlu1 %145 }
  0x8e   :  { %v141_v40 = vpop.permute.xlu0 %140  ;;  %v185_v43 = vadd.f32 %v1407_v18, %v146_v39  ;;  %v1434_v52 = vmax.f32 %v177_v34, %v193_v42  ;;  %v1517_v34 = vld [vmem:[#allocation2 + $0x48] sm:$0xff] }
  0x8f   :  { %v184_v44 = vadd.f32 %v1407_v18, %v141_v40  ;;  %v1428_v45 = vmax.f32 %v176_v35, %v192_v38 }
  0x90   :  { %v201_v47 = vmul.f32 0.01, %v185_v43 }
  0x91   :  { %v200_v46 = vmul.f32 0.01, %v184_v44  ;;  %240 = vmax.xlane.f32.xlu0 %v1424_v41  ;;  %226 = vmax.xlane.f32.xlu1 %v1428_v45  ;;  %v116_v48 = vpop.permute.xlu1 %115 }
  0x92   :  { %v111_v49 = vpop.permute.xlu0 %110  ;;  %v179_v50 = vadd.f32 %v1407_v18, %v116_v48  ;;  %v1440_v57 = vmax.f32 %v185_v43, %v201_v47  ;;  %v1540_v47 = vld [vmem:[#allocation2 + $0x18] sm:$0xff] }
  0x93   :  { %v178_v51 = vadd.f32 %v1407_v18, %v111_v49  ;;  %v1436_v53 = vmax.f32 %v184_v44, %v200_v46  ;;  %v1210_v44 = vld [vmem:[%s1912_s2 + $0x10] sm:$0xff]  }
  0x94   :  { %v195_v58 = vmul.f32 0.01, %v179_v50  ;;  %v1538_v46 = vld [vmem:[#allocation2 + $0x50] sm:$0xff]  ;;  %1159 = vmatprep.subr.bf16.mxu0 %v1210_v44  ;;  %1189 = vmatprep.subr.bf16.mxu1 %v1210_v44 }
  0x95   :  { %v194_v54 = vmul.f32 0.01, %v178_v51  ;;  %228 = vmax.xlane.f32.xlu0 %v1434_v52  ;;  %242 = vmax.xlane.f32.xlu1 %v1436_v53  ;;  %v156_v55 = vpop.permute.xlu1 %155 }
  0x96   :  { %v151_v56 = vpop.permute.xlu0 %150  ;;  %v187_v59 = vadd.f32 %v1407_v18, %v156_v55  ;;  %v1450_v4 = vmax.f32 %v179_v50, %v195_v58  ;;  %1160 = vmatpush3.bf16.msra.mxu0 %v1210_v44  ;;  %1197 = vmatpush3.bf16.msra.mxu1 %v1210_v44  ;;  %v1561_v58 = vld [vmem:[#allocation2 + $0x20] sm:$0xff] }
  0x97   :  { %v186_v60 = vadd.f32 %v1407_v18, %v151_v56  ;;  %v1444_v61 = vmax.f32 %v178_v51, %v194_v54  ;;  %v1211_v56 = vld [vmem:[%s1912_s2 + $0x18] sm:$0xff]  }
  0x98   :  { %v203_v63 = vmul.f32 0.01, %v187_v59  ;;  %1161 = vmatprep.subr.bf16.mxu0 %v1211_v56  ;;  %1190 = vmatprep.subr.bf16.mxu1 %v1211_v56 }
  0x99   :  { %v202_v62 = vmul.f32 0.01, %v186_v60  ;;  %244 = vmax.xlane.f32.xlu0 %v1440_v57  ;;  %230 = vmax.xlane.f32.xlu1 %v1444_v61  ;;  %v126_v0 = vpop.permute.xlu1 %125 }
  0x9a   :  { %v121_v1 = vpop.permute.xlu0 %120  ;;  %v181_v2 = vadd.f32 %v1407_v18, %v126_v0  ;;  %v1456_v9 = vmax.f32 %v187_v59, %v203_v63  ;;  %v1563_v59 = vld [vmem:[#allocation2 + $0x58] sm:$0xff]  ;;  %1162 = vmatpush3.bf16.msra.mxu0 %v1211_v56  ;;  %1198 = vmatpush3.bf16.msra.mxu1 %v1211_v56 }
  0x9b   :  { %v180_v3 = vadd.f32 %v1407_v18, %v121_v1  ;;  %v1452_v5 = vmax.f32 %v186_v60, %v202_v62  ;;  %v1632_v56 = vld [vmem:[#allocation2 + $0x38] sm:$0xff] }
  0x9c   :  { %v197_v10 = vmul.f32 0.01, %v181_v2 }
  0x9d   :  { %v196_v6 = vmul.f32 0.01, %v180_v3  ;;  %232 = vmax.xlane.f32.xlu0 %v1450_v4  ;;  %246 = vmax.xlane.f32.xlu1 %v1452_v5  ;;  %v166_v7 = vpop.permute.xlu1 %165 }
  0x9e   :  { %v161_v8 = vpop.permute.xlu0 %160  ;;  %v189_v11 = vadd.f32 %v1407_v18, %v166_v7  ;;  %v1480_v17 = vmax.f32 %v181_v2, %v197_v10  ;;  %v1586_v7 = vld [vmem:[#allocation2 + $0x28] sm:$0xff] }
  0x9f   :  { %v188_v12 = vadd.f32 %v1407_v18, %v161_v8  ;;  %v1460_v13 = vmax.f32 %v180_v3, %v196_v6  ;;  %v1212_v3 = vld [vmem:[%s1912_s2 + $0x20] sm:$0xff]  }
  0xa0   :  { %v205_v16 = vmul.f32 0.01, %v189_v11  ;;  %v1584_v6 = vld [vmem:[#allocation2 + $0x60] sm:$0xff]  ;;  %1163 = vmatprep.subr.bf16.mxu0 %v1212_v3  ;;  %1191 = vmatprep.subr.bf16.mxu1 %v1212_v3 }
  0xa1   :  { %v204_v14 = vmul.f32 0.01, %v188_v12  ;;  %248 = vmax.xlane.f32.xlu0 %v1456_v9  ;;  %234 = vmax.xlane.f32.xlu1 %v1460_v13 }
  0xa2   :  { %v1486_v19 = vmax.f32 %v189_v11, %v205_v16  ;;  %1164 = vmatpush3.bf16.msra.mxu0 %v1212_v3  ;;  %v1213_v16 = vld [vmem:[%s1912_s2 + $0x28] sm:$0xff]   ;;  %1199 = vmatpush3.bf16.msra.mxu1 %v1212_v3 }
  0xa3   :  { %v1482_v18 = vmax.f32 %v188_v12, %v204_v14  ;;  %1165 = vmatprep.subr.bf16.mxu0 %v1213_v16  ;;  %1192 = vmatprep.subr.bf16.mxu1 %v1213_v16 }
  0xa5   :  { %236 = vmax.xlane.f32.xlu0 %v1480_v17  ;;  %250 = vmax.xlane.f32.xlu1 %v1482_v18 }
  0xa6   :  { %1166 = vmatpush3.bf16.msra.mxu0 %v1213_v16  ;;  %1200 = vmatpush3.bf16.msra.mxu1 %v1213_v16 }
  0xa9   :  { %252 = vmax.xlane.f32.xlu0 %v1486_v19 }
 0x116   :  { %v223_v22 = vpop.xlane.xlu0 %222 }
 0x117   :  { %v1495_v23 = vmax.f32 %v1492_v21, %v223_v22  ;;  %v1609_v22 = vld [vmem:[#allocation2 + $0x68] sm:$0xff] }
 0x119   :  { %929 = vst.msk [vmem:[#allocation2] sm:$0xff] %vm22_vm0, %v1495_v23  ;;  %336 = vperm.xlu1 %1207, %v1495_v23  }
 0x11a   :  { %v225_v27 = vpop.xlane.xlu1 %224  ;;  %v239_v28 = vpop.xlane.xlu0 %238 }
 0x11b   :  { %v1507_v30 = vmax.f32 %v1497_v24, %v225_v27  ;;  %v1510_v31 = vmax.f32 %v1499_v25, %v239_v28 }
 0x11d   :  { %930 = vst.msk [vmem:[#allocation2 + $0x8] sm:$0xff] %vm22_vm0, %v1507_v30  ;;  %937 = vst.msk [vmem:[#allocation2 + $0x40] sm:$0xff] %vm22_vm0, %v1510_v31  ;;  %341 = vperm.xlu0 %1206, %v1507_v30   ;;  %376 = vperm.xlu1 %1207, %v1510_v31  }
 0x11e   :  { %v227_v39 = vpop.xlane.xlu1 %226  ;;  %v241_v40 = vpop.xlane.xlu0 %240 }
 0x11f   :  { %v1530_v42 = vmax.f32 %v1515_v33, %v227_v39  ;;  %v1533_v43 = vmax.f32 %v1517_v34, %v241_v40 }
 0x121   :  { %931 = vst.msk [vmem:[#allocation2 + $0x10] sm:$0xff] %vm22_vm0, %v1530_v42  ;;  %938 = vst.msk [vmem:[#allocation2 + $0x48] sm:$0xff] %vm22_vm0, %v1533_v43  ;;  %346 = vperm.xlu0 %1206, %v1530_v42   ;;  %381 = vperm.xlu1 %1207, %v1533_v43  }
 0x122   :  { %v243_v50 = vpop.xlane.xlu1 %242  ;;  %v229_v51 = vpop.xlane.xlu0 %228 }
 0x123   :  { %v1553_v54 = vmax.f32 %v1538_v46, %v243_v50  ;;  %v1556_v55 = vmax.f32 %v1540_v47, %v229_v51  ;;  %v1214_v50 = vld [vmem:[%s1912_s2 + $0x30] sm:$0xff]  }
 0x124   :  { %v1630_v51 = vld [vmem:[#allocation2 + $0x70] sm:$0xff]  ;;  %1167 = vmatprep.subr.bf16.mxu0 %v1214_v50  ;;  %1193 = vmatprep.subr.bf16.mxu1 %v1214_v50 }
 0x125   :  { %939 = vst.msk [vmem:[#allocation2 + $0x50] sm:$0xff] %vm22_vm0, %v1553_v54  ;;  %932 = vst.msk [vmem:[#allocation2 + $0x18] sm:$0xff] %vm22_vm0, %v1556_v55  ;;  %386 = vperm.xlu0 %1206, %v1553_v54   ;;  %351 = vperm.xlu1 %1207, %v1556_v55  }
 0x126   :  { %v231_v63 = vpop.xlane.xlu1 %230  ;;  %v245_v0 = vpop.xlane.xlu0 %244  ;;  %1168 = vmatpush3.bf16.msra.mxu0 %v1214_v50  ;;  %1201 = vmatpush3.bf16.msra.mxu1 %v1214_v50 }
 0x127   :  { %v1576_v1 = vmax.f32 %v1561_v58, %v231_v63  ;;  %v1579_v2 = vmax.f32 %v1563_v59, %v245_v0 }
 0x129   :  { %933 = vst.msk [vmem:[#allocation2 + $0x20] sm:$0xff] %vm22_vm0, %v1576_v1  ;;  %940 = vst.msk [vmem:[#allocation2 + $0x58] sm:$0xff] %vm22_vm0, %v1579_v2  ;;  %356 = vperm.xlu0 %1206, %v1576_v1   ;;  %391 = vperm.xlu1 %1207, %v1579_v2  }
 0x12a   :  { %v247_v11 = vpop.xlane.xlu1 %246  ;;  %v233_v12 = vpop.xlane.xlu0 %232 }
 0x12b   :  { %v1599_v14 = vmax.f32 %v1584_v6, %v247_v11  ;;  %v1602_v15 = vmax.f32 %v1586_v7, %v233_v12 }
 0x12d   :  { %941 = vst.msk [vmem:[#allocation2 + $0x60] sm:$0xff] %vm22_vm0, %v1599_v14  ;;  %934 = vst.msk [vmem:[#allocation2 + $0x28] sm:$0xff] %vm22_vm0, %v1602_v15  ;;  %396 = vperm.xlu0 %1206, %v1599_v14   ;;  %361 = vperm.xlu1 %1207, %v1602_v15  }
 0x12e   :  { %v235_v32 = vpop.xlane.xlu1 %234  ;;  %v249_v39 = vpop.xlane.xlu0 %248 }
 0x12f   :  { %v1622_v40 = vmax.f32 %v1607_v20, %v235_v32  ;;  %v1625_v44 = vmax.f32 %v1609_v22, %v249_v39  ;;  %v1215_v32 = vld [vmem:[%s1912_s2 + $0x38] sm:$0xff]  }
 0x130   :  { %v1653_v39 = vld [vmem:[#allocation2 + $0x78] sm:$0xff]  ;;  %1169 = vmatprep.subr.bf16.mxu0 %v1215_v32  ;;  %1194 = vmatprep.subr.bf16.mxu1 %v1215_v32 }
 0x131   :  { %935 = vst.msk [vmem:[#allocation2 + $0x30] sm:$0xff] %vm22_vm0, %v1622_v40  ;;  %942 = vst.msk [vmem:[#allocation2 + $0x68] sm:$0xff] %vm22_vm0, %v1625_v44  ;;  %366 = vperm.xlu0 %1206, %v1622_v40   ;;  %401 = vperm.xlu1 %1207, %v1625_v44  }
 0x132   :  { %v251_v3 = vpop.xlane.xlu1 %250  ;;  %v237_v11 = vpop.xlane.xlu0 %236  ;;  %1170 = vmatpush3.bf16.msra.mxu0 %v1215_v32  ;;  %1202 = vmatpush3.bf16.msra.mxu1 %v1215_v32  ;;  %v462_v32 = vld [vmem:[%s1913_s3] sm:$0xff] }
 0x133   :  { %v1645_v12 = vmax.f32 %v1630_v51, %v251_v3  ;;  %v1648_v16 = vmax.f32 %v1632_v56, %v237_v11  ;;  %v466_v62 = vunpack.c.0.s8 %v462_v32 }
 0x135   :  { %943 = vst.msk [vmem:[#allocation2 + $0x70] sm:$0xff] %vm22_vm0, %v1645_v12  ;;  %936 = vst.msk [vmem:[#allocation2 + $0x38] sm:$0xff] %vm22_vm0, %v1648_v16  ;;  %406 = vperm.xlu0 %1206, %v1645_v12   ;;  %371 = vperm.xlu1 %1207, %v1648_v16  }
 0x136   :  { %v253_v11 = vpop.xlane.xlu0 %252 }
 0x137   :  { %v1666_v50 = vmax.f32 %v1653_v39, %v253_v11 }
 0x139   :  { %1916 = vst [vmem:[#allocation4_spill] sm:$0xff] %v1666_v50  ;;  %944 = vst.msk [vmem:[#allocation2 + $0x78] sm:$0xff] %vm22_vm0, %v1666_v50  ;;  %411 = vperm.xlu1 %1207, %v1666_v50  }
 0x198   :  { %v337_v27 = vpop.permute.xlu1 %336 }
 0x199   :  { %v414_v10 = vsub.f32 %v1413_v29, %v337_v27 }
 0x19b   :  { %v430_v60 = vmul.f32 1.442695, %v414_v10 }
 0x19c   :  { %v377_v49 = vpop.permute.xlu1 %376  ;;  %v342_v38 = vpop.permute.xlu0 %341 }
 0x19d   :  { %1216 = vpow2.f32 %v430_v60  ;;  %v422_v11 = vsub.f32 %v1418_v36, %v377_v49  ;;  %v415_v3 = vsub.f32 %v1420_v37, %v342_v38  ;;  %v482_v37 = vcvt.s32.f32 %v466_v62 }
 0x19f   :  { %v446_v0 = vmul.f32 1.442695, %v422_v11  ;;  %v432_v63 = vmul.f32 1.442695, %v415_v3  ;;  %v467_v3 = vunpack.c.1.s8 %v462_v32  ;;  %v1686_v11 = vld [vmem:[%s1913_s3 + $0x10] sm:$0xff] }
 0x1a0   :  { %v382_v28 = vpop.permute.xlu1 %381  ;;  %v347_v8 = vpop.permute.xlu0 %346  ;;  %v474_v62 = vunpack.c.0.s8 %v1686_v11 }
 0x1a1   :  { %v423_v35 = vsub.f32 %v1424_v41, %v382_v28  ;;  %v416_v29 = vsub.f32 %v1428_v45, %v347_v8  ;;  %1218 = vpow2.f32 %v432_v63 }
 0x1a2   :  { %1220 = vpow2.f32 %v446_v0  ;;  %v468_v0 = vunpack.c.2.s8 %v462_v32 }
 0x1a3   :  { %v448_v60 = vmul.f32 1.442695, %v423_v35  ;;  %v434_v10 = vmul.f32 1.442695, %v416_v29 }
 0x1a4   :  { %v352_v36 = vpop.permute.xlu1 %351  ;;  %v387_v49 = vpop.permute.xlu0 %386 }
 0x1a5   :  { %1222 = vpow2.f32 %v448_v60  ;;  %v417_v38 = vsub.f32 %v1434_v52, %v352_v36  ;;  %v424_v27 = vsub.f32 %v1436_v53, %v387_v49  ;;  %v475_v52 = vunpack.c.1.s8 %v1686_v11 }
 0x1a6   :  { %1224 = vpow2.f32 %v434_v10  ;;  %v483_v60 = vcvt.s32.f32 %v467_v3  ;;  %v469_v49 = vunpack.c.3.s8 %v462_v32  ;;  %v476_v32 = vunpack.c.2.s8 %v1686_v11 }
 0x1a7   :  { %v1217_v41 = vpop.eup %1216  ;;  %v436_v45 = vmul.f32 1.442695, %v417_v38  ;;  %v450_v8 = vmul.f32 1.442695, %v424_v27  ;;  %v491_v26 = vcvt.s32.f32 %v475_v52 }
 0x1a8   :  { %v392_v35 = vpop.permute.xlu1 %391  ;;  %v357_v28 = vpop.permute.xlu0 %356  ;;  %v498_v63 = vmul.f32 %v1217_v41, %v482_v37  ;;  %v484_v37 = vcvt.s32.f32 %v468_v0  ;;  %v490_v41 = vcvt.s32.f32 %v474_v62  ;;  %v485_v62 = vcvt.s32.f32 %v469_v49 }
 0x1a9   :  { %1226 = vpow2.f32 %v436_v45  ;;  %v425_v53 = vsub.f32 %v1440_v57, %v392_v35  ;;  %v418_v29 = vsub.f32 %v1444_v61, %v357_v28  ;;  %v1697_v61 = vld [vmem:[%s1913_s3 + $0x8] sm:$0xff] }
 0x1aa   :  { %546 = vadd.xlane.f32.xlu0 %v498_v63  ;;  %1228 = vpow2.f32 %v450_v8 }
 0x1ab   :  { %v452_v10 = vmul.f32 1.442695, %v425_v53  ;;  %v438_v36 = vmul.f32 1.442695, %v418_v29  ;;  %v1219_v38 = vpop.eup %1218 }
 0x1ac   :  { %v362_v27 = vpop.permute.xlu1 %361  ;;  %v397_v48 = vpop.permute.xlu0 %396  ;;  %v499_v35 = vmul.f32 %v1219_v38, %v483_v60  ;;  %v477_v60 = vunpack.c.3.s8 %v1686_v11  ;;  %v492_v11 = vcvt.s32.f32 %v476_v32 }
 0x1ad   :  { %v1221_v50 = vpop.eup %1220  ;;  %1230 = vpow2.f32 %v452_v10  ;;  %v419_v45 = vsub.f32 %v1450_v4, %v362_v27  ;;  %v426_v57 = vsub.f32 %v1452_v5, %v397_v48  ;;  %v470_v48 = vunpack.c.0.s8 %v1697_v61 }
 0x1ae   :  { %1232 = vpow2.f32 %v438_v36  ;;  %548 = vadd.xlane.f32.xlu1 %v499_v35  ;;  %v744_v0 = vpack.c.bf16 %v499_v35, %v498_v63  ;;  %v1700_v29 = vmul.f32 %v1221_v50, %v490_v41 }
 0x1af   :  { %v1223_v3 = vpop.eup %1222  ;;  %v440_v8 = vmul.f32 1.442695, %v419_v45  ;;  %v454_v28 = vmul.f32 1.442695, %v426_v57  ;;  %v493_v57 = vcvt.s32.f32 %v477_v60 }
 0x1b0   :  { %v1225_v52 = vpop.eup %1224  ;;  %v402_v53 = vpop.permute.xlu1 %401  ;;  %v1702_v5 = vmul.f32 %v1223_v3, %v491_v26  ;;  %1171 = vmatprep.mubr.bf16.mxu0 %v744_v0 }
 0x1b1   :  { %v367_v4 = vpop.permute.xlu0 %366  ;;  %1234 = vpow2.f32 %v440_v8  ;;  %v427_v10 = vsub.f32 %v1456_v9, %v402_v53  ;;  %v500_v38 = vmul.f32 %v1225_v52, %v484_v37  ;;  %v471_v9 = vunpack.c.1.s8 %v1697_v61 }
 0x1b2   :  { %v420_v36 = vsub.f32 %v1460_v13, %v367_v4  ;;  %v748_v63 = vpack.c.bf16 %v1702_v5, %v1700_v29  ;;  %1236 = vpow2.f32 %v454_v28  ;;  %v465_v13 = vld [vmem:[%s1913_s3 + $0x18] sm:$0xff]  ;;  %v486_v8 = vcvt.s32.f32 %v470_v48 }
 0x1b3   :  { %v1227_v49 = vpop.eup %1226  ;;  %v456_v50 = vmul.f32 1.442695, %v427_v10  ;;  %550 = vadd.xlane.f32.xlu0 %v500_v38  ;;  %v478_v32 = vunpack.c.0.s8 %v465_v13 }
 0x1b4   :  { %v442_v27 = vmul.f32 1.442695, %v420_v36  ;;  %1179 = vmatprep.mubr.bf16.mxu1 %v748_v63  ;;  %v372_v26 = vpop.permute.xlu1 %371  ;;  %v501_v45 = vmul.f32 %v1227_v49, %v485_v62  ;;  %v1229_v37 = vpop.eup %1228  ;;  %v487_v36 = vcvt.s32.f32 %v471_v9  ;;  %v479_v63 = vunpack.c.1.s8 %v465_v13 }
 0x1b5   :  { %v407_v41 = vpop.permute.xlu0 %406  ;;  %1238 = vpow2.f32 %v456_v50  ;;  %v421_v35 = vsub.f32 %v1480_v17, %v372_v26  ;;  %v508_v60 = vmul.f32 %v1229_v37, %v492_v11  ;;  %v494_v26 = vcvt.s32.f32 %v478_v32 }
 0x1b6   :  { %v428_v3 = vsub.f32 %v1482_v18, %v407_v41  ;;  %1240 = vpow2.f32 %v442_v27  ;;  %v745_v28 = vpack.c.bf16 %v501_v45, %v500_v38  ;;  %v472_v18 = vunpack.c.2.s8 %v1697_v61 }
 0x1b7   :  { %v1231_v0 = vpop.eup %1230  ;;  %v444_v52 = vmul.f32 1.442695, %v421_v35  ;;  %552 = vadd.xlane.f32.xlu0 %v501_v45  ;;  %v495_v41 = vcvt.s32.f32 %v479_v63  ;;  %v473_v45 = vunpack.c.3.s8 %v1697_v61  ;;  %v480_v37 = vunpack.c.2.s8 %v465_v13 }
 0x1b8   :  { %v458_v62 = vmul.f32 1.442695, %v428_v3  ;;  %v1233_v53 = vpop.eup %1232  ;;  %v412_v4 = vpop.permute.xlu1 %411  ;;  %1172 = vmatmul.mubr.bf16.vlgmr.msra.gmra.mrb[0].mxu0 %v745_v28  ;;  %v509_v10 = vmul.f32 %v1231_v0, %v493_v57  ;;  %v488_v57 = vcvt.s32.f32 %v472_v18  ;;  %v481_v0 = vunpack.c.3.s8 %v465_v13 }
 0x1b9   :  { %1242 = vpow2.f32 %v444_v52  ;;  %v429_v17 = vsub.f32 %v1486_v19, %v412_v4  ;;  %v502_v49 = vmul.f32 %v1233_v53, %v486_v8  ;;  %v489_v28 = vcvt.s32.f32 %v473_v45 }
 0x1ba   :  { %v749_v48 = vpack.c.bf16 %v509_v10, %v508_v60  ;;  %1244 = vpow2.f32 %v458_v62  ;;  %v496_v61 = vcvt.s32.f32 %v480_v37  ;;  %v497_v4 = vcvt.s32.f32 %v481_v0 }
 0x1bb   :  { %v1235_v38 = vpop.eup %1234  ;;  %v460_v50 = vmul.f32 1.442695, %v429_v17  ;;  %554 = vadd.xlane.f32.xlu1 %v502_v49  ;;  %v1927_v45 = vsub.f32 %v1538_v46, %v1553_v54  ;;  %v1930_v46 = vsub.f32 %v1609_v22, %v1625_v44 }
 0x1bc   :  { %1180 = vmatmul.mubr.bf16.vlgmr.msra.gmra.mrb[0].mxu1 %v749_v48  ;;  %v503_v27 = vmul.f32 %v1235_v38, %v487_v36  ;;  %v1237_v11 = vpop.eup %1236  ;;  %v1917_v48 = vsub.f32 %v1492_v21, %v1495_v23  ;;  %v1921_v21 = vsub.f32 %v1561_v58, %v1576_v1  ;;  %v1925_v58 = vsub.f32 %v1499_v25, %v1510_v31 }
 0x1bd   :  { %1246 = vpow2.f32 %v460_v50  ;;  %v510_v3 = vmul.f32 %v1237_v11, %v494_v26  ;;  %v1922_v26 = vsub.f32 %v1586_v7, %v1602_v15  ;;  %v1926_v7 = vsub.f32 %v1517_v34, %v1533_v43 }
 0x1be   :  { %556 = vadd.xlane.f32.xlu0 %v503_v27  ;;  %v746_v9 = vpack.c.bf16 %v503_v27, %v502_v49  ;;  %v302_v38 = vmul.f32 1.442695, %v1917_v48  ;;  %v310_v23 = vmul.f32 1.442695, %v1921_v21  ;;  %v318_v1 = vmul.f32 1.442695, %v1925_v58 }
 0x1bf   :  { %v1239_v19 = vpop.eup %1238  ;;  %v320_v15 = vmul.f32 1.442695, %v1926_v7  ;;  %v1928_v25 = vsub.f32 %v1563_v59, %v1579_v2  ;;  %v1929_v34 = vsub.f32 %v1584_v6, %v1599_v14  ;;  %v328_v54 = vmul.f32 1.442695, %v1930_v46  ;;  %v1932_v6 = vld [vmem:[#allocation4_spill] sm:$0xff] }
 0x1c0   :  { %v1241_v35 = vpop.eup %1240  ;;  %1175 = vmatprep.mubr.bf16.mxu0 %v746_v9  ;;  %v511_v8 = vmul.f32 %v1239_v19, %v495_v41  ;;  %1248 = vpow2.f32 %v302_v38  ;;  %v1931_v2 = vsub.f32 %v1630_v51, %v1645_v12  ;;  %v1933_v14 = vsub.f32 %v1653_v39, %v1932_v6 }
 0x1c1   :  { %v504_v52 = vmul.f32 %v1241_v35, %v488_v57  ;;  %v324_v31 = vmul.f32 1.442695, %v1928_v25  ;;  %v326_v43 = vmul.f32 1.442695, %v1929_v34 }
 0x1c2   :  { %v750_v62 = vpack.c.bf16 %v511_v8, %v510_v3  ;;  %v330_v9 = vmul.f32 1.442695, %v1931_v2  ;;  %v332_v19 = vmul.f32 1.442695, %v1933_v14 }
 0x1c3   :  { %v1243_v53 = vpop.eup %1242  ;;  %558 = vadd.xlane.f32.xlu1 %v504_v52 }
 0x1c4   :  { %1183 = vmatprep.mubr.bf16.mxu1 %v750_v62  ;;  %v505_v32 = vmul.f32 %v1243_v53, %v489_v28  ;;  %v1245_v36 = vpop.eup %1244  ;;  %v515_v62 = vld [vmem:[#allocation3 + $0x8] sm:$0xff] }
 0x1c5   :  { %v512_v49 = vmul.f32 %v1245_v36, %v496_v61  ;;  %v516_v61 = vld [vmem:[#allocation3 + $0x10] sm:$0xff] }
 0x1c6   :  { %560 = vadd.xlane.f32.xlu0 %v505_v32  ;;  %v747_v63 = vpack.c.bf16 %v505_v32, %v504_v52 }
 0x1c7   :  { %v1247_v17 = vpop.eup %1246  ;;  %562 = vadd.xlane.f32.xlu1 %v1700_v29  ;;  %v1918_v29 = vsub.f32 %v1515_v33, %v1530_v42  ;;  %v312_v33 = vmul.f32 1.442695, %v1922_v26 }
 0x1c8   :  { %1176 = vmatmul.mubr.bf16.gmra.mrb[4].mxu0 %v747_v63  ;;  %v513_v18 = vmul.f32 %v1247_v17, %v497_v4  ;;  %v517_v17 = vld [vmem:[#allocation3 + $0x18] sm:$0xff] }
 0x1c9   :  { %v306_v50 = vmul.f32 1.442695, %v1918_v29  ;;  %v518_v29 = vld [vmem:[#allocation3 + $0x20] sm:$0xff] }
 0x1ca   :  { %564 = vadd.xlane.f32.xlu0 %v1702_v5  ;;  %v751_v13 = vpack.c.bf16 %v513_v18, %v512_v49  ;;  %v1919_v5 = vsub.f32 %v1497_v24, %v1507_v30  ;;  %v1249_v42 = vpop.eup %1248  ;;  %v1923_v24 = vsub.f32 %v1607_v20, %v1622_v40 }
 0x1cb   :  { %566 = vadd.xlane.f32.xlu1 %v508_v60  ;;  %1250 = vpow2.f32 %v306_v50  ;;  %v1920_v60 = vsub.f32 %v1540_v47, %v1556_v55  ;;  %v1924_v47 = vsub.f32 %v1632_v56, %v1648_v16  ;;  %v322_v56 = vmul.f32 1.442695, %v1927_v45 }
 0x1cc   :  { %1184 = vmatmul.mubr.bf16.gmra.mrb[4].mxu1 %v751_v13  ;;  %v304_v27 = vmul.f32 1.442695, %v1919_v5  ;;  %v314_v30 = vmul.f32 1.442695, %v1923_v24 }
 0x1cd   :  { %v316_v55 = vmul.f32 1.442695, %v1924_v47  ;;  %v520_v47 = vld [vmem:[#allocation3 + $0x30] sm:$0xff] }
 0x1ce   :  { %568 = vadd.xlane.f32.xlu0 %v509_v10  ;;  %v308_v10 = vmul.f32 1.442695, %v1920_v60  ;;  %1252 = vpow2.f32 %v304_v27  ;;  %v519_v60 = vld [vmem:[#allocation3 + $0x28] sm:$0xff] }
 0x1cf   :  { %570 = vadd.xlane.f32.xlu1 %v510_v3 }
 0x1d0   :  { %1254 = vpow2.f32 %v308_v10 }
 0x1d1   :  { %1256 = vpow2.f32 %v310_v23 }
 0x1d2   :  { %572 = vadd.xlane.f32.xlu0 %v511_v8  ;;  %1258 = vpow2.f32 %v312_v33  ;;  %v514_v8 = vld [vmem:[#allocation3] sm:$0xff] }
 0x1d3   :  { %574 = vadd.xlane.f32.xlu1 %v512_v49  ;;  %1260 = vpow2.f32 %v314_v30  ;;  %v530_v28 = vmul.f32 %v1249_v42, %v514_v8 }
 0x1d4   :  { %1262 = vpow2.f32 %v316_v55 }
 0x1d5   :  { %v1251_v41 = vpop.eup %1250  ;;  %1264 = vpow2.f32 %v318_v1  ;;  %v521_v1 = vld [vmem:[#allocation3 + $0x38] sm:$0xff] }
 0x1d6   :  { %576 = vadd.xlane.f32.xlu0 %v513_v18  ;;  %1266 = vpow2.f32 %v320_v15  ;;  %v532_v36 = vmul.f32 %v1251_v41, %v516_v61 }
 0x1d7   :  { %1268 = vpow2.f32 %v322_v56 }
 0x1d8   :  { %v1253_v20 = vpop.eup %1252  ;;  %1270 = vpow2.f32 %v324_v31 }
 0x1d9   :  { %1272 = vpow2.f32 %v326_v43  ;;  %v531_v53 = vmul.f32 %v1253_v20, %v515_v62 }
 0x1da   :  { %v1255_v40 = vpop.eup %1254  ;;  %1274 = vpow2.f32 %v328_v54  ;;  %v524_v54 = vld [vmem:[#allocation3 + $0x50] sm:$0xff] }
 0x1db   :  { %v1257_v16 = vpop.eup %1256  ;;  %1276 = vpow2.f32 %v330_v9  ;;  %v533_v48 = vmul.f32 %v1255_v40, %v517_v17  ;;  %v528_v17 = vld [vmem:[#allocation3 + $0x70] sm:$0xff] }
 0x1dc   :  { %v1757_v11 = vpop.eup %1258  ;;  %1278 = vpow2.f32 %v332_v19  ;;  %v534_v27 = vmul.f32 %v1257_v16, %v518_v29 }
 0x1dd   :  { %v1766_v57 = vpop.eup %1260  ;;  %v535_v26 = vmul.f32 %v1757_v11, %v519_v60 }
 0x1de   :  { %v1768_v59 = vpop.eup %1262  ;;  %v536_v58 = vmul.f32 %v1766_v57, %v520_v47 }
 0x1df   :  { %v1778_v22 = vpop.eup %1264  ;;  %v537_v45 = vmul.f32 %v1768_v59, %v521_v1 }
 0x1e0   :  { %v1780_v44 = vpop.eup %1266 }
 0x1e1   :  { %v1784_v51 = vpop.eup %1268 }
 0x1e2   :  { %v1786_v12 = vpop.eup %1270  ;;  %v540_v14 = vmul.f32 %v1784_v51, %v524_v54 }
 0x1e3   :  { %v1790_v39 = vpop.eup %1272 }
 0x1e4   :  { %650 = vperm.xlu1 %1207, %v1249_v42   ;;  %v1792_v37 = vpop.eup %1274 }
 0x1e5   :  { %v1796_v35 = vpop.eup %1276 }
 0x1e6   :  { %v1798_v3 = vpop.eup %1278 }
 0x1e8   :  { %660 = vperm.xlu1 %1207, %v1251_v41  }
 0x1ec   :  { %665 = vperm.xlu1 %1207, %v1255_v40   ;;  %655 = vperm.xlu0 %1206, %v1253_v20   ;;  %v522_v20 = vld [vmem:[#allocation3 + $0x40] sm:$0xff] }
 0x1ed   :  { %v538_v31 = vmul.f32 %v1778_v22, %v522_v20 }
 0x1f0   :  { %675 = vperm.xlu1 %1207, %v1757_v11   ;;  %670 = vperm.xlu0 %1206, %v1257_v16   ;;  %v523_v11 = vld [vmem:[#allocation3 + $0x48] sm:$0xff] }
 0x1f4   :  { %685 = vperm.xlu1 %1207, %v1768_v59   ;;  %680 = vperm.xlu0 %1206, %v1766_v57   ;;  %v539_v59 = vmul.f32 %v1780_v44, %v523_v11 }
 0x1f8   :  { %695 = vperm.xlu1 %1207, %v1780_v44   ;;  %690 = vperm.xlu0 %1206, %v1778_v22   ;;  %v525_v22 = vld [vmem:[#allocation3 + $0x58] sm:$0xff] }
 0x1f9   :  { %v541_v62 = vmul.f32 %v1786_v12, %v525_v22 }
 0x1fc   :  { %705 = vperm.xlu1 %1207, %v1786_v12   ;;  %700 = vperm.xlu0 %1206, %v1784_v51   ;;  %v527_v51 = vld [vmem:[#allocation3 + $0x68] sm:$0xff] }
 0x1fd   :  { %v543_v12 = vmul.f32 %v1792_v37, %v527_v51 }
 0x200   :  { %715 = vperm.xlu1 %1207, %v1792_v37   ;;  %710 = vperm.xlu0 %1206, %v1790_v39  }
 0x204   :  { %725 = vperm.xlu1 %1207, %v1798_v3   ;;  %720 = vperm.xlu0 %1206, %v1796_v35  }
 0x237   :  { %v547_v0 = vpop.xlane.xlu0 %546 }
 0x238   :  { %v578_v52 = vadd.f32 %v547_v0, %v530_v28  ;;  %v526_v0 = vld [vmem:[#allocation3 + $0x60] sm:$0xff] }
 0x23a   :  { %595 = vst.msk [vmem:[#allocation3] sm:$0xff] %vm22_vm0, %v578_v52 }
 0x23b   :  { %v549_v32 = vpop.xlane.xlu1 %548 }
 0x23c   :  { %v579_v4 = vadd.f32 %v549_v32, %v531_v53  ;;  %v542_v32 = vmul.f32 %v1790_v39, %v526_v0  ;;  %v544_v39 = vmul.f32 %v1796_v35, %v528_v17 }
 0x23e   :  { %596 = vst.msk [vmem:[#allocation3 + $0x8] sm:$0xff] %vm22_vm0, %v579_v4 }
 0x240   :  { %v551_v63 = vpop.xlane.xlu0 %550 }
 0x241   :  { %v580_v49 = vadd.f32 %v551_v63, %v532_v36  ;;  %v948_v18 = vld [vmem:[#allocation3] sm:$0xff] }
 0x242   :  { %v964_v13 = vmax.f32 %v948_v18, 1e-30 }
 0x243   :  { %597 = vst.msk [vmem:[#allocation3 + $0x10] sm:$0xff] %vm22_vm0, %v580_v49 }
 0x244   :  { %v553_v38 = vpop.xlane.xlu0 %552  ;;  %1280 = vrcp.f32 %v964_v13 }
 0x245   :  { %v581_v50 = vadd.f32 %v553_v38, %v533_v48  ;;  %v949_v5 = vld [vmem:[#allocation3 + $0x8] sm:$0xff] }
 0x246   :  { %v965_v10 = vmax.f32 %v949_v5, 1e-30 }
 0x247   :  { %598 = vst.msk [vmem:[#allocation3 + $0x18] sm:$0xff] %vm22_vm0, %v581_v50  ;;  %v529_v50 = vld [vmem:[#allocation3 + $0x78] sm:$0xff] }
 0x248   :  { %v555_v21 = vpop.xlane.xlu1 %554  ;;  %1282 = vrcp.f32 %v965_v10  ;;  %v545_v37 = vmul.f32 %v1798_v3, %v529_v50 }
 0x249   :  { %v582_v23 = vadd.f32 %v555_v21, %v534_v27 }
 0x24a   :  { %v950_v33 = vld [vmem:[#allocation3 + $0x10] sm:$0xff] }
 0x24b   :  { %599 = vst.msk [vmem:[#allocation3 + $0x20] sm:$0xff] %vm22_vm0, %v582_v23  ;;  %v557_v42 = vpop.xlane.xlu0 %556  ;;  %v966_v24 = vmax.f32 %v950_v33, 1e-30 }
 0x24c   :  { %v583_v30 = vadd.f32 %v557_v42, %v535_v26 }
 0x24d   :  { %1284 = vrcp.f32 %v966_v24 }
 0x24e   :  { %v1281_v55 = vpop.eup %1280  ;;  %600 = vst.msk [vmem:[#allocation3 + $0x28] sm:$0xff] %vm22_vm0, %v583_v30  ;;  %v951_v41 = vld [vmem:[#allocation3 + $0x18] sm:$0xff] }
 0x24f   :  { %1014 = vperm.xlu0 %1206, %v1281_v55   ;;  %v967_v7 = vmax.f32 %v951_v41, 1e-30 }
 0x250   :  { %v559_v15 = vpop.xlane.xlu1 %558 }
 0x251   :  { %v584_v40 = vadd.f32 %v559_v15, %v536_v58  ;;  %1286 = vrcp.f32 %v967_v7 }
 0x252   :  { %v952_v56 = vld [vmem:[#allocation3 + $0x20] sm:$0xff]  ;;  %v1283_v25 = vpop.eup %1282 }
 0x253   :  { %601 = vst.msk [vmem:[#allocation3 + $0x30] sm:$0xff] %vm22_vm0, %v584_v40  ;;  %v561_v16 = vpop.xlane.xlu0 %560  ;;  %v968_v34 = vmax.f32 %v952_v56, 1e-30  ;;  %1019 = vperm.xlu1 %1207, %v1283_v25  }
 0x254   :  { %v563_v43 = vpop.xlane.xlu1 %562  ;;  %v585_v46 = vadd.f32 %v561_v16, %v537_v45 }
 0x255   :  { %v586_v57 = vadd.f32 %v563_v43, %v538_v31  ;;  %1288 = vrcp.f32 %v968_v34  ;;  %v953_v2 = vld [vmem:[#allocation3 + $0x28] sm:$0xff] }
 0x256   :  { %602 = vst.msk [vmem:[#allocation3 + $0x38] sm:$0xff] %vm22_vm0, %v585_v46  ;;  %v969_v9 = vmax.f32 %v953_v2, 1e-30 }
 0x257   :  { %v1285_v6 = vpop.eup %1284  ;;  %603 = vst.msk [vmem:[#allocation3 + $0x40] sm:$0xff] %vm22_vm0, %v586_v57  ;;  %v565_v19 = vpop.xlane.xlu0 %564 }
 0x258   :  { %v567_v8 = vpop.xlane.xlu1 %566  ;;  %1024 = vperm.xlu0 %1206, %v1285_v6   ;;  %v587_v28 = vadd.f32 %v565_v19, %v539_v59  ;;  %1290 = vrcp.f32 %v969_v9 }
 0x259   :  { %v588_v52 = vadd.f32 %v567_v8, %v540_v14 }
 0x25a   :  { %604 = vst.msk [vmem:[#allocation3 + $0x48] sm:$0xff] %vm22_vm0, %v587_v28  ;;  %v954_v53 = vld [vmem:[#allocation3 + $0x30] sm:$0xff] }
 0x25b   :  { %v1287_v44 = vpop.eup %1286  ;;  %605 = vst.msk [vmem:[#allocation3 + $0x50] sm:$0xff] %vm22_vm0, %v588_v52  ;;  %v569_v61 = vpop.xlane.xlu0 %568  ;;  %v970_v4 = vmax.f32 %v954_v53, 1e-30 }
 0x25c   :  { %v571_v36 = vpop.xlane.xlu1 %570  ;;  %1029 = vperm.xlu1 %1207, %v1287_v44   ;;  %v589_v63 = vadd.f32 %v569_v61, %v541_v62 }
 0x25d   :  { %v590_v49 = vadd.f32 %v571_v36, %v542_v32  ;;  %1292 = vrcp.f32 %v970_v4  ;;  %v955_v18 = vld [vmem:[#allocation3 + $0x38] sm:$0xff] }
 0x25e   :  { %606 = vst.msk [vmem:[#allocation3 + $0x58] sm:$0xff] %vm22_vm0, %v589_v63  ;;  %v956_v13 = vld [vmem:[#allocation3 + $0x40] sm:$0xff]  ;;  %v971_v48 = vmax.f32 %v955_v18, 1e-30 }
 0x25f   :  { %v1289_v38 = vpop.eup %1288  ;;  %607 = vst.msk [vmem:[#allocation3 + $0x60] sm:$0xff] %vm22_vm0, %v590_v49  ;;  %v573_v29 = vpop.xlane.xlu0 %572  ;;  %v972_v5 = vmax.f32 %v956_v13, 1e-30 }
 0x260   :  { %v575_v27 = vpop.xlane.xlu1 %574  ;;  %1034 = vperm.xlu0 %1206, %v1289_v38   ;;  %v591_v60 = vadd.f32 %v573_v29, %v543_v12  ;;  %1294 = vrcp.f32 %v971_v48 }
 0x261   :  { %v592_v10 = vadd.f32 %v575_v27, %v544_v39  ;;  %1296 = vrcp.f32 %v972_v5  ;;  %v957_v21 = vld [vmem:[#allocation3 + $0x48] sm:$0xff] }
 0x262   :  { %v1291_v23 = vpop.eup %1290  ;;  %608 = vst.msk [vmem:[#allocation3 + $0x68] sm:$0xff] %vm22_vm0, %v591_v60  ;;  %v958_v26 = vld [vmem:[#allocation3 + $0x50] sm:$0xff]  ;;  %v973_v33 = vmax.f32 %v957_v21, 1e-30 }
 0x263   :  { %609 = vst.msk [vmem:[#allocation3 + $0x70] sm:$0xff] %vm22_vm0, %v592_v10  ;;  %1039 = vperm.xlu1 %1207, %v1291_v23   ;;  %v577_v35 = vpop.xlane.xlu0 %576  ;;  %v974_v42 = vmax.f32 %v958_v26, 1e-30 }
 0x264   :  { %v593_v24 = vadd.f32 %v577_v35, %v545_v37  ;;  %1298 = vrcp.f32 %v973_v33  ;;  %v651_v52 = vpop.permute.xlu1 %650 }
 0x265   :  { %1300 = vrcp.f32 %v974_v42  ;;  %v959_v30 = vld [vmem:[#allocation3 + $0x58] sm:$0xff]  ;;  %v728_v50 = vmul.f32 0.0, %v651_v52 }
 0x266   :  { %610 = vst.msk [vmem:[#allocation3 + $0x78] sm:$0xff] %vm22_vm0, %v593_v24  ;;  %v960_v47 = vld [vmem:[#allocation3 + $0x60] sm:$0xff]  ;;  %v975_v55 = vmax.f32 %v959_v30, 1e-30 }
 0x267   :  { %v1293_v41 = vpop.eup %1292  ;;  %v976_v58 = vmax.f32 %v960_v47, 1e-30 }
 0x268   :  { %1044 = vperm.xlu0 %1206, %v1293_v41   ;;  %1302 = vrcp.f32 %v975_v55  ;;  %v661_v61 = vpop.permute.xlu1 %660 }
 0x269   :  { %1304 = vrcp.f32 %v976_v58  ;;  %v961_v3 = vld [vmem:[#allocation3 + $0x68] sm:$0xff]  ;;  %v730_v26 = vmul.f32 0.0, %v661_v61 }
 0x26a   :  { %v1295_v1 = vpop.eup %1294  ;;  %v962_v7 = vld [vmem:[#allocation3 + $0x70] sm:$0xff]  ;;  %v977_v15 = vmax.f32 %v961_v3, 1e-30 }
 0x26b   :  { %v1297_v20 = vpop.eup %1296  ;;  %1049 = vperm.xlu1 %1207, %v1295_v1   ;;  %v978_v40 = vmax.f32 %v962_v7, 1e-30  ;;  %v656_v51 = vpop.permute.xlu0 %655 }
 0x26c   :  { %1054 = vperm.xlu0 %1206, %v1297_v20   ;;  %1306 = vrcp.f32 %v977_v15  ;;  %v666_v4 = vpop.permute.xlu1 %665  ;;  %v729_v21 = vmul.f32 0.0, %v656_v51 }
 0x26d   :  { %1308 = vrcp.f32 %v978_v40  ;;  %v963_v45 = vld [vmem:[#allocation3 + $0x78] sm:$0xff]  ;;  %v731_v24 = vmul.f32 0.0, %v666_v4 }
 0x26e   :  { %v1299_v56 = vpop.eup %1298  ;;  %v979_v25 = vmax.f32 %v963_v45, 1e-30 }
 0x26f   :  { %v1301_v31 = vpop.eup %1300  ;;  %1059 = vperm.xlu1 %1207, %v1299_v56   ;;  %v671_v36 = vpop.permute.xlu0 %670 }
 0x270   :  { %1064 = vperm.xlu0 %1206, %v1301_v31   ;;  %1310 = vrcp.f32 %v979_v25  ;;  %v676_v63 = vpop.permute.xlu1 %675  ;;  %v732_v41 = vmul.f32 0.0, %v671_v36 }
 0x271   :  { %v733_v1 = vmul.f32 0.0, %v676_v63 }
 0x272   :  { %v1303_v16 = vpop.eup %1302 }
 0x273   :  { %v1305_v11 = vpop.eup %1304  ;;  %1069 = vperm.xlu1 %1207, %v1303_v16   ;;  %v681_v17 = vpop.permute.xlu0 %680 }
 0x274   :  { %1074 = vperm.xlu0 %1206, %v1305_v11   ;;  %v686_v49 = vpop.permute.xlu1 %685  ;;  %v734_v56 = vmul.f32 0.0, %v681_v17 }
 0x275   :  { %v735_v31 = vmul.f32 0.0, %v686_v49 }
 0x276   :  { %v1307_v34 = vpop.eup %1306 }
 0x277   :  { %v1309_v43 = vpop.eup %1308  ;;  %1079 = vperm.xlu1 %1207, %v1307_v34   ;;  %v691_v18 = vpop.permute.xlu0 %690 }
 0x278   :  { %1084 = vperm.xlu0 %1206, %v1309_v43   ;;  %v696_v12 = vpop.permute.xlu1 %695  ;;  %v736_v11 = vmul.f32 0.0, %v691_v18 }
 0x27a   :  { %v1311_v46 = vpop.eup %1310 }
 0x27b   :  { %1089 = vperm.xlu1 %1207, %v1311_v46   ;;  %v701_v13 = vpop.permute.xlu0 %700 }
 0x27c   :  { %v706_v48 = vpop.permute.xlu1 %705 }
 0x27f   :  { %v711_v38 = vpop.permute.xlu0 %710 }
 0x280   :  { %v1845_v39 = vpop.permute.xlu1 %715  ;;  %v740_v4 = vmul.f32 0.0, %v711_v38 }
 0x281   :  { %v741_v17 = vmul.f32 0.0, %v1845_v39 }
 0x283   :  { %v1847_v29 = vpop.permute.xlu0 %720 }
 0x284   :  { %v1849_v60 = vpop.permute.xlu1 %725 }
 0x285   :  { %v743_v38 = vmul.f32 0.0, %v1849_v60 }
 0x28b   :  { %v1173_v54 = vpop.f32.mrb[0].mxu0 }
 0x28c   :  { %v834_v57 = vpop.f32.mrb[1].mxu0  ;;  %v899_v35 = vadd.f32 %v1173_v54, %v730_v26 }
 0x28d   :  { %v1174_v2 = vpop.f32.mrb[2].mxu0  ;;  %v897_v5 = vadd.f32 %v834_v57, %v728_v50  ;;  %v737_v57 = vmul.f32 0.0, %v696_v12  ;;  %v742_v12 = vmul.f32 0.0, %v1847_v29 }
 0x28e   :  { %v837_v59 = vpop.f32.mrb[3].mxu0  ;;  %v900_v47 = vadd.f32 %v1174_v2, %v731_v24 }
 0x28f   :  { %v1829_v9 = vpop.f32.mrb[0].mxu1  ;;  %v898_v23 = vadd.f32 %v837_v59, %v729_v21 }
 0x290   :  { %v1831_v6 = vpop.f32.mrb[1].mxu1 }
 0x291   :  { %v1833_v14 = vpop.f32.mrb[2].mxu1  ;;  %v905_v46 = vadd.f32 %v1831_v6, %v736_v11 }
 0x292   :  { %v1835_v19 = vpop.f32.mrb[3].mxu1 }
 0x293   :  { %v906_v52 = vadd.f32 %v1835_v19, %v737_v57 }
 0x29b   :  { %v1177_v22 = vpop.f32.mrb[4].mxu0 }
 0x29c   :  { %v850_v8 = vpop.f32.mrb[5].mxu0  ;;  %v903_v25 = vadd.f32 %v1177_v22, %v734_v56 }
 0x29d   :  { %v1178_v28 = vpop.f32.mrb[6].mxu0  ;;  %v901_v3 = vadd.f32 %v850_v8, %v732_v41  ;;  %v738_v8 = vmul.f32 0.0, %v701_v13 }
 0x29e   :  { %v853_v0 = vpop.f32.mrb[7].mxu0  ;;  %v904_v43 = vadd.f32 %v1178_v28, %v735_v31  ;;  %v739_v28 = vmul.f32 0.0, %v706_v48 }
 0x29f   :  { %v1837_v62 = vpop.f32.mrb[4].mxu1  ;;  %v902_v20 = vadd.f32 %v853_v0, %v733_v1  ;;  %v907_v22 = vadd.f32 %v1829_v9, %v738_v8 }
 0x2a0   :  { %v1839_v53 = vpop.f32.mrb[5].mxu1  ;;  %v908_v63 = vadd.f32 %v1833_v14, %v739_v28 }
 0x2a1   :  { %v1841_v44 = vpop.f32.mrb[6].mxu1  ;;  %v909_v19 = vadd.f32 %v1839_v53, %v740_v4  ;;  %v911_v53 = vadd.f32 %v1837_v62, %v742_v12 }
 0x2a2   :  { %v1843_v32 = vpop.f32.mrb[7].mxu1  ;;  %v912_v29 = vadd.f32 %v1841_v44, %v743_v38 }
 0x2a3   :  { %v910_v14 = vadd.f32 %v1843_v32, %v741_v17 }
 0x2ce   :  { %v1015_v27 = vpop.permute.xlu0 %1014 }
 0x2cf   :  { %v1092_v10 = vmul.f32 %v1015_v27, %v897_v5 }
 0x2d1   :  { %1108 = vst [vmem:[%s1914_s4] sm:$0xff] %v1092_v10 }
 0x2d2   :  { %v1020_v37 = vpop.permute.xlu1 %1019 }
 0x2d3   :  { %v1093_v33 = vmul.f32 %v1020_v37, %v898_v23 }
 0x2d5   :  { %1109 = vst [vmem:[%s1914_s4 + $0x8] sm:$0xff] %v1093_v33 }
 0x2d7   :  { %v1025_v42 = vpop.permute.xlu0 %1024 }
 0x2d8   :  { %v1094_v30 = vmul.f32 %v1025_v42, %v899_v35 }
 0x2da   :  { %1110 = vst [vmem:[%s1914_s4 + $0x10] sm:$0xff] %v1094_v30 }
 0x2db   :  { %v1030_v55 = vpop.permute.xlu1 %1029 }
 0x2dc   :  { %v1095_v58 = vmul.f32 %v1030_v55, %v900_v47 }
 0x2de   :  { %1111 = vst [vmem:[%s1914_s4 + $0x18] sm:$0xff] %v1095_v58 }
 0x2df   :  { %v1035_v7 = vpop.permute.xlu0 %1034 }
 0x2e0   :  { %v1096_v15 = vmul.f32 %v1035_v7, %v901_v3 }
 0x2e2   :  { %1112 = vst [vmem:[%s1914_s4 + $0x20] sm:$0xff] %v1096_v15  ;;  %v1040_v40 = vpop.permute.xlu1 %1039 }
 0x2e3   :  { %v1097_v45 = vmul.f32 %v1040_v40, %v902_v20 }
 0x2e5   :  { %1113 = vst [vmem:[%s1914_s4 + $0x28] sm:$0xff] %v1097_v45 }
 0x2e7   :  { %v1045_v16 = vpop.permute.xlu0 %1044 }
 0x2e8   :  { %v1098_v34 = vmul.f32 %v1045_v16, %v903_v25 }
 0x2ea   :  { %1114 = vst [vmem:[%s1914_s4 + $0x30] sm:$0xff] %v1098_v34  ;;  %v1050_v54 = vpop.permute.xlu1 %1049 }
 0x2eb   :  { %v1099_v2 = vmul.f32 %v1050_v54, %v904_v43  ;;  %v1055_v59 = vpop.permute.xlu0 %1054 }
 0x2ec   :  { %v1100_v0 = vmul.f32 %v1055_v59, %v905_v46 }
 0x2ed   :  { %1115 = vst [vmem:[%s1914_s4 + $0x38] sm:$0xff] %v1099_v2 }
 0x2ee   :  { %1116 = vst [vmem:[%s1914_s4 + $0x40] sm:$0xff] %v1100_v0  ;;  %v1060_v6 = vpop.permute.xlu1 %1059 }
 0x2ef   :  { %v1101_v61 = vmul.f32 %v1060_v6, %v906_v52  ;;  %v1065_v51 = vpop.permute.xlu0 %1064 }
 0x2f0   :  { %v1102_v36 = vmul.f32 %v1065_v51, %v907_v22 }
 0x2f1   :  { %1117 = vst [vmem:[%s1914_s4 + $0x48] sm:$0xff] %v1101_v61 }
 0x2f2   :  { %1118 = vst [vmem:[%s1914_s4 + $0x50] sm:$0xff] %v1102_v36  ;;  %v1070_v9 = vpop.permute.xlu1 %1069 }
 0x2f3   :  { %v1103_v49 = vmul.f32 %v1070_v9, %v908_v63  ;;  %v1075_v18 = vpop.permute.xlu0 %1074 }
 0x2f4   :  { %v1104_v13 = vmul.f32 %v1075_v18, %v909_v19 }
 0x2f5   :  { %1119 = vst [vmem:[%s1914_s4 + $0x58] sm:$0xff] %v1103_v49 }
 0x2f6   :  { %1120 = vst [vmem:[%s1914_s4 + $0x60] sm:$0xff] %v1104_v13  ;;  %v1080_v48 = vpop.permute.xlu1 %1079 }
 0x2f7   :  { %v1105_v39 = vmul.f32 %v1080_v48, %v910_v14  ;;  %v1085_v50 = vpop.permute.xlu0 %1084 }
 0x2f8   :  { %v1106_v5 = vmul.f32 %v1085_v50, %v911_v53 }
 0x2f9   :  { %1121 = vst [vmem:[%s1914_s4 + $0x68] sm:$0xff] %v1105_v39 }
 0x2fa   :  { %1122 = vst [vmem:[%s1914_s4 + $0x70] sm:$0xff] %v1106_v5  ;;  %v1090_v62 = vpop.permute.xlu1 %1089 }
 0x2fb   :  { %v1107_v32 = vmul.f32 %v1090_v62, %v912_v29 }
 0x2fd   :  { %1123 = vst [vmem:[%s1914_s4 + $0x78] sm:$0xff] %v1107_v32 }

</bundles_post_ra>
